<compile_context>
chip_gen: v6e
topology: v6e:2x2x1
jax: 0.10.0
libtpu: 0.0.40
codegen_flags: <defaults>
</compile_context>

<pallas_src>
import functools
import math

import jax
import jax.numpy as jnp
from jax.experimental import pallas as pl
from jax.experimental.pallas import tpu as pltpu

# Keep XLA's reference matmuls in full f32 so the correctness check is tight.
jax.config.update("jax_default_matmul_precision", "highest")

_LN_EPS = 1e-5
_GELU_C = 0.7978845608028654  # sqrt(2/pi)
_NEG_INF = -1e30


def _layernorm_f32(x, g, b):
    x = x.astype(jnp.float32)
    mu = jnp.mean(x, axis=-1, keepdims=True)
    xc = x - mu
    var = jnp.mean(xc * xc, axis=-1, keepdims=True)
    return xc * jax.lax.rsqrt(var + _LN_EPS) * g.astype(jnp.float32) \
        + b.astype(jnp.float32)


# ----------------------------------------------------------------------------
# Kernel 1: LN1 + fused QKV projection, row-tiled (i) and output-N-tiled (n)
# ----------------------------------------------------------------------------
def _ln_qkv_kernel(x_ref, g_ref, b_ref, w_ref, bias_ref, qkv_ref, ln_scr):
    @pl.when(pl.program_id(1) == 0)
    def _init():
        # LayerNorm computed once per row tile, cached in the weight dtype so the
        # per-N-tile matmul needs no repeated VPU cast.
        ln_scr[...] = _layernorm_f32(x_ref[...], g_ref[...],
                                     b_ref[...]).astype(ln_scr.dtype)

    acc = jnp.dot(ln_scr[...], w_ref[...], preferred_element_type=jnp.float32)
    qkv_ref[...] = (acc + bias_ref[...].astype(jnp.float32)).astype(qkv_ref.dtype)


# ----------------------------------------------------------------------------
# Kernel 2: causal attention, one batch element (all heads) per grid step.
# Reads q/k/v straight out of the (T, 3E) qkv slab — no wrapper transposes.
# ----------------------------------------------------------------------------
def _causal_attn_kernel(qkv_ref, o_ref, *, n_head, scale):
    # TODO(synk): flash-style KV tiling (online softmax) for T >~ 2048 so the
    # per-head (T, T) score working set stays bounded on v7x's 64 MiB VMEM.
    T = qkv_ref.shape[0]
    E = o_ref.shape[1]
    hd = E // n_head

    qkv = qkv_ref[...]
    q = qkv[:, 0:E].astype(jnp.float32) * scale        # fold scale into q: O(T*E)
    k = qkv[:, E:2 * E].astype(jnp.float32)
    v = qkv[:, 2 * E:3 * E]

    # Causal mask from (T,1) vs (1,T) iotas (no (T,T) int32 index tensors).
    row = jax.lax.broadcasted_iota(jnp.int32, (T, 1), 0)
    col = jax.lax.broadcasted_iota(jnp.int32, (1, T), 1)
    causal = col <= row

    outs = []
    for h in range(n_head):                            # static unroll over heads
        sl = slice(h * hd, (h + 1) * hd)
        s = jax.lax.dot_general(q[:, sl], k[:, sl], (((1,), (1,)), ((), ())),
                                preferred_element_type=jnp.float32)
        s = jnp.where(causal, s, _NEG_INF)
        m = jnp.max(s, axis=-1, keepdims=True)
        p = jnp.exp(s - m)
        l = jnp.sum(p, axis=-1, keepdims=True)
        o_h = jnp.dot(p.astype(v.dtype), v[:, sl],
                      preferred_element_type=jnp.float32)
        # Normalize the small (T, hd) output rather than the (T, T) probs; the
        # reciprocal goes to the EUP slot.
        outs.append(o_h * pl.reciprocal(l, approx=True))

    o_ref[...] = jnp.concatenate(outs, axis=-1).astype(o_ref.dtype)


# ----------------------------------------------------------------------------
# Kernel 3: attn-out projection + residual fused with LN2 + MLP (H tiled,
# f32 accumulator) + final residual.  x1 never round-trips through HBM.
# ----------------------------------------------------------------------------
def _proj_ln_mlp_kernel(x_ref, attn_ref, wo_ref, bo_ref, g_ref, b_ref,
                        w1_ref, b1_ref, w2_ref, b2_ref,
                        o_ref, x1_scr, ln_scr, acc_scr):
    h_idx = pl.program_id(1)

    @pl.when(h_idx == 0)
    def _init():
        proj = jnp.dot(attn_ref[...].astype(wo_ref.dtype), wo_ref[...],
                       preferred_element_type=jnp.float32) \
            + bo_ref[...].astype(jnp.float32)
        x1 = x_ref[...].astype(jnp.float32) + proj
        x1_scr[...] = x1                                       # residual cache (f32)
        ln_scr[...] = _layernorm_f32(x1, g_ref[...],
                                     b_ref[...]).astype(ln_scr.dtype)
        acc_scr[...] = jnp.zeros_like(acc_scr)

    h = jnp.dot(ln_scr[...], w1_ref[...], preferred_element_type=jnp.float32) \
        + b1_ref[...].astype(jnp.float32)
    # GELU, tanh approximation (matches torch.nn.GELU(approximate='tanh')), f32.
    h = 0.5 * h * (1.0 + jnp.tanh(_GELU_C * (h + 0.044715 * h * h * h)))
    acc_scr[...] += jnp.dot(h.astype(w2_ref.dtype), w2_ref[...],
                            preferred_element_type=jnp.float32)

    @pl.when(h_idx == pl.num_programs(1) - 1)
    def _finalize():
        o_ref[...] = (x1_scr[...] + acc_scr[...]
                      + b2_ref[...].astype(jnp.float32)).astype(o_ref.dtype)


# ----------------------------------------------------------------------------
# Tile selection helpers
# ----------------------------------------------------------------------------
def _pick_block(n, target, mult):
    """Largest divisor of n that is <= target and a multiple of mult (else n)."""
    if n <= target:
        return n
    blk = (target // mult) * mult
    while blk >= mult:
        if n % blk == 0:
            return blk
        blk -= mult
    return n


def _tpu_defaults():
    """(block_m target, physical VMEM bytes) based on the attached TPU generation."""
    kind = ""
    try:
        kind = jax.devices()[0].device_kind.lower()
    except Exception:  # pragma: no cover - CPU / unknown backend fallback
        pass
    if "v7" in kind:
        return 512, 64 * 2**20       # v7x: 64 MiB VMEM, 3.2 TB/s HBM
    if "v6" in kind:
        return 1024, 128 * 2**20     # v6e: needs ~bm>=768 to be MXU-bound
    if "v5" in kind:
        return 512, 128 * 2**20
    return 512, 64 * 2**20           # unknown: conservative


# ----------------------------------------------------------------------------
# Wrapper: full Block forward
# ----------------------------------------------------------------------------
@functools.partial(jax.jit,
                   static_argnames=("n_head", "block_m", "tile_h", "tile_n"))
def block_forward(x, params, *, n_head, block_m=None, tile_h=2048, tile_n=1536):
    """nanoGPT Block forward. x: (B, T, E); linear weights stored (in, out)."""
    B, T, E = x.shape
    assert E % n_head == 0
    hd = E // n_head
    M = B * T
    E3 = 3 * E
    H = params["w_fc"].shape[1]
    dtype = x.dtype
    dbytes = jnp.dtype(dtype).itemsize
    wdtype = params["w_fc"].dtype
    wbytes = jnp.dtype(wdtype).itemsize

    bm_target, vmem_phys = _tpu_defaults()
    if block_m is not None:
        bm_target = block_m
    vmem_cap = vmem_phys - 16 * 2**20    # headroom for Mosaic internal scratch

    # bf16 tiles want sublane multiples of 16; T must tile sublanes for the
    # per-batch attention block.
    mult = 16 if min(dbytes, wbytes) < 4 else 8
    assert T % 8 == 0, "T must be a multiple of 8 (sublane tiling)"

    bm = _pick_block(M, bm_target, mult)
    if M > bm_target and bm == M:
        raise ValueError("B*T has no tile-aligned divisor <= block_m; pad B*T")
    th = _pick_block(H, tile_h, 128)
    tn = _pick_block(E3, tile_n, 128)

    # Full VMEM accounting for the proj+LN2+MLP kernel, including the (bm, th)
    # f32 GELU intermediate and its weight-dtype recast.  Shrink (th, bm) until
    # it leaves headroom under the per-generation cap (matters on v7x first).
    def _mlp_vmem(bm_, th_):
        return (2 * (E * th_ + th_ * E + th_) * wbytes   # streamed weight tiles x2 buf
                + 2 * 2 * bm_ * E * dbytes               # x + attn input tiles x2 buf
                + 2 * bm_ * E * dbytes                   # out tile x2 buf
                + 2 * (E * E + 4 * E) * wbytes           # resident wo + small vecs
                + bm_ * E * (4 + 4 + wbytes)             # x1 / acc (f32) + ln cache
                + bm_ * th_ * (4 + wbytes))              # GELU intermediate + recast

    budget = int(0.6 * vmem_cap)
    while (_mlp_vmem(bm, th) > budget and th > 512
           and th % 256 == 0 and H % (th // 2) == 0):
        th //= 2
    while (_mlp_vmem(bm, th) > budget and bm > 2 * mult
           and bm % (2 * mult) == 0 and M % (bm // 2) == 0):
        bm //= 2
    # NOTE(v7x): with 2 TensorCores, M // bm should be >= 2 so both cores get
    # work on the "parallel" axis; callers with tiny M should shrink block_m.

    x2 = x.reshape(M, E)
    g1 = params["ln1_g"].reshape(1, E)
    be1 = params["ln1_b"].reshape(1, E)
    g2 = params["ln2_g"].reshape(1, E)
    be2 = params["ln2_b"].reshape(1, E)
    bo = params["bo"].reshape(1, E)
    b_fc = params["b_fc"].reshape(1, H)
    b_pr = params["b_proj"].reshape(1, E)

    # Fused QKV weight/bias, column order [q | k | v].
    w_qkv = jnp.concatenate([params["wq"], params["wk"], params["wv"]], axis=1)
    b_qkv = jnp.concatenate([params["bq"], params["bk"],
                             params["bv"]]).reshape(1, E3)

    # ---- Kernel 1: LN1 + fused QKV projection ------------------------------
    qkv_vmem = (2 * bm * E * dbytes
                + bm * E * (wbytes + 4)
                + 2 * (E * tn + tn) * wbytes
                + 2 * bm * tn * dbytes
                + 4 * E * wbytes)
    qkv_cost = pl.CostEstimate(
        flops=int(2 * M * E * E3),
        transcendentals=int(M),
        bytes_accessed=int((M * E + M * E3) * dbytes
                           + (E * E3 + E3 + 2 * E) * wbytes))

    qkv = pl.pallas_call(
        _ln_qkv_kernel,
        out_shape=jax.ShapeDtypeStruct((M, E3), dtype),
        grid_spec=pltpu.PrefetchScalarGridSpec(
            num_scalar_prefetch=0,
            grid=(M // bm, E3 // tn),
            in_specs=[
                pl.BlockSpec((bm, E), lambda i, n: (i, 0)),    # x
                pl.BlockSpec((1, E), lambda i, n: (0, 0)),     # ln1 gamma
                pl.BlockSpec((1, E), lambda i, n: (0, 0)),     # ln1 beta
                pl.BlockSpec((E, tn), lambda i, n: (0, n)),    # w_qkv tile
                pl.BlockSpec((1, tn), lambda i, n: (0, n)),    # b_qkv tile
            ],
            out_specs=pl.BlockSpec((bm, tn), lambda i, n: (i, n)),
            scratch_shapes=[pltpu.VMEM((bm, E), wdtype)],      # LN1 cache
        ),
        compiler_params=pltpu.CompilerParams(
            dimension_semantics=("parallel", "arbitrary"),
            vmem_limit_bytes=int(min(vmem_cap, max(2 * qkv_vmem, 16 * 2**20)))),
        cost_estimate=qkv_cost,
    )(x2, g1, be1, w_qkv, b_qkv)

    # ---- Kernel 2: causal attention (per batch, all heads) ------------------
    attn_vmem = (2 * T * E3 * dbytes        # qkv tile x2 buf
                 + 2 * T * E * dbytes       # out tile x2 buf
                 + 3 * T * E * 4            # q/k f32 copies (+ scaled q)
                 + 4 * T * T * 4)           # per-head score/prob/mask live set
    attn_cost = pl.CostEstimate(
        flops=int(4 * B * T * T * E),
        transcendentals=int(B * n_head * T * T),
        bytes_accessed=int((M * E3 + M * E) * dbytes))

    attn = pl.pallas_call(
        functools.partial(_causal_attn_kernel, n_head=n_head,
                          scale=1.0 / math.sqrt(hd)),
        out_shape=jax.ShapeDtypeStruct((M, E), dtype),
        grid_spec=pltpu.PrefetchScalarGridSpec(
            num_scalar_prefetch=0,
            grid=(B,),
            in_specs=[pl.BlockSpec((T, E3), lambda b: (b, 0))],
            out_specs=pl.BlockSpec((T, E), lambda b: (b, 0)),
        ),
        compiler_params=pltpu.CompilerParams(
            dimension_semantics=("parallel",),
            vmem_limit_bytes=int(min(vmem_cap, max(2 * attn_vmem, 16 * 2**20)))),
        cost_estimate=attn_cost,
    )(qkv)

    # ---- Kernel 3: attn projection + residual + LN2 + MLP + residual --------
    mlp_vmem = _mlp_vmem(bm, th)
    mlp_cost = pl.CostEstimate(
        flops=int(2 * M * E * E + 4 * M * E * H),
        transcendentals=int(M * H + M),
        bytes_accessed=int(3 * M * E * dbytes
                           + (E * E + 2 * E * H + H + 6 * E) * wbytes))

    out = pl.pallas_call(
        _proj_ln_mlp_kernel,
        out_shape=jax.ShapeDtypeStruct((M, E), dtype),
        grid_spec=pltpu.PrefetchScalarGridSpec(
            num_scalar_prefetch=0,
            grid=(M // bm, H // th),
            in_specs=[
                pl.BlockSpec((bm, E), lambda i, h: (i, 0)),    # x2 (residual)
                pl.BlockSpec((bm, E), lambda i, h: (i, 0)),    # attention output
                pl.BlockSpec((E, E), lambda i, h: (0, 0)),     # wo (resident)
                pl.BlockSpec((1, E), lambda i, h: (0, 0)),     # bo
                pl.BlockSpec((1, E), lambda i, h: (0, 0)),     # ln2 gamma
                pl.BlockSpec((1, E), lambda i, h: (0, 0)),     # ln2 beta
                pl.BlockSpec((E, th), lambda i, h: (0, h)),    # w_fc tile
                pl.BlockSpec((1, th), lambda i, h: (0, h)),    # b_fc tile
                pl.BlockSpec((th, E), lambda i, h: (h, 0)),    # w_proj tile
                pl.BlockSpec((1, E), lambda i, h: (0, 0)),     # b_proj
            ],
            out_specs=pl.BlockSpec((bm, E), lambda i, h: (i, 0)),
            scratch_shapes=[pltpu.VMEM((bm, E), jnp.float32),  # x1 residual cache
                            pltpu.VMEM((bm, E), wdtype),       # LN2 cache (w dtype)
                            pltpu.VMEM((bm, E), jnp.float32)], # f32 accumulator
        ),
        compiler_params=pltpu.CompilerParams(
            dimension_semantics=("parallel", "arbitrary"),
            vmem_limit_bytes=int(min(vmem_cap,
                                     max(int(1.25 * mlp_vmem), 16 * 2**20)))),
        cost_estimate=mlp_cost,
    )(x2, attn, params["wo"], bo, g2, be2,
      params["w_fc"], b_fc, params["w_proj"], b_pr)

    return out.reshape(B, T, E)


# ----------------------------------------------------------------------------
# Pure-JAX reference for correctness checking
# ----------------------------------------------------------------------------
def _reference_block(x, params, n_head):
    B, T, E = x.shape
    hd = E // n_head

    def ln(z, g, b):
        mu = z.mean(-1, keepdims=True)
        zc = z - mu
        var = (zc * zc).mean(-1, keepdims=True)
        return zc * jax.lax.rsqrt(var + _LN_EPS) * g + b

    h = ln(x, params["ln1_g"], params["ln1_b"])
    q = h @ params["wq"] + params["bq"]
    k = h @ params["wk"] + params["bk"]
    v = h @ params["wv"] + params["bv"]
    q = q.reshape(B, T, n_head, hd).transpose(0, 2, 1, 3)
    k = k.reshape(B, T, n_head, hd).transpose(0, 2, 1, 3)
    v = v.reshape(B, T, n_head, hd).transpose(0, 2, 1, 3)
    s = jnp.einsum("bhqd,bhkd->bhqk", q, k) / math.sqrt(hd)
    mask = jnp.tril(jnp.ones((T, T), dtype=bool))
    s = jnp.where(mask, s, _NEG_INF)
    p = jax.nn.softmax(s, axis=-1)
    y = jnp.einsum("bhqk,bhkd->bhqd", p, v)
    y = y.transpose(0, 2, 1, 3).reshape(B, T, E)
    x = x + y @ params["wo"] + params["bo"]

    h2 = ln(x, params["ln2_g"], params["ln2_b"])
    a = h2 @ params["w_fc"] + params["b_fc"]
    a = 0.5 * a * (1.0 + jnp.tanh(_GELU_C * (a + 0.044715 * a ** 3)))
    return x + a @ params["w_proj"] + params["b_proj"]


if __name__ == "__main__":
    # Small config consistent with the module: n_embd=32, n_head=4, hidden=128.
    B, T, E, n_head = 2, 8, 32, 4
    H = 4 * E

    key = jax.random.PRNGKey(0)
    keys = jax.random.split(key, 17)

    def normal(k, shape, scale=0.02):
        return jax.random.normal(k, shape, dtype=jnp.float32) * scale

    x = jax.random.normal(keys[0], (B, T, E), dtype=jnp.float32)
    params = {
        "ln1_g": jnp.ones((E,), jnp.float32) + normal(keys[15], (E,)),
        "ln1_b": normal(keys[16], (E,)),
        "wq": normal(keys[1], (E, E)), "bq": normal(keys[2], (E,)),
        "wk": normal(keys[3], (E, E)), "bk": normal(keys[4], (E,)),
        "wv": normal(keys[5], (E, E)), "bv": normal(keys[6], (E,)),
        "wo": normal(keys[7], (E, E)), "bo": normal(keys[8], (E,)),
        "ln2_g": jnp.ones((E,), jnp.float32) + normal(keys[9], (E,)),
        "ln2_b": normal(keys[10], (E,)),
        "w_fc": normal(keys[11], (E, H)), "b_fc": normal(keys[12], (H,)),
        "w_proj": normal(keys[13], (H, E)), "b_proj": normal(keys[14], (E,)),
    }

    y = block_forward(x, params, n_head=n_head)
    y = jax.block_until_ready(y)

    y_ref = _reference_block(x, params, n_head)
    assert y.shape == (B, T, E)
    err = float(jnp.max(jnp.abs(y - y_ref)))
    # approx=True reciprocal in the softmax normalization -> slightly relaxed tol.
    assert jnp.allclose(y, y_ref, atol=2e-3, rtol=2e-3), f"mismatch vs reference: {err}"

    print("KERNEL_OK")
</pallas_src>

<mosaic_0001>
module attributes {stable_mosaic.version = 11 : i64} {
  func.func @_causal_attn_kernel(%arg0: i32, %arg1: memref<8x96xf32, #tpu.memory_space<vmem>>, %arg2: memref<8x32xf32, #tpu.memory_space<vmem>>) attributes {dimension_semantics = [#tpu.dimension_semantics<parallel>], iteration_bounds = array<i64: 2>, scalar_prefetch = 0 : i64, scratch_operands = 0 : i64, tpu.core_type = #tpu.core_type<tc>, window_params = [{transform_indices = @transform_0, window_bounds = array<i64: 8, 96>}, {transform_indices = @transform_1, window_bounds = array<i64: 8, 32>}]} {
    %c0 = arith.constant 0 : index
    %c0_0 = arith.constant 0 : index
    %0 = vector.load %arg1[%c0, %c0_0] : memref<8x96xf32, #tpu.memory_space<vmem>>, vector<8x96xf32>
    %1 = vector.extract_strided_slice %0 {offsets = [0, 0], sizes = [8, 32], strides = [1, 1]} : vector<8x96xf32> to vector<8x32xf32>
    %cst = arith.constant 0.353553385 : f32
    %2 = vector.broadcast %cst : f32 to vector<8x32xf32>
    %3 = arith.mulf %1, %2 : vector<8x32xf32>
    %4 = vector.extract_strided_slice %0 {offsets = [0, 32], sizes = [8, 32], strides = [1, 1]} : vector<8x96xf32> to vector<8x32xf32>
    %5 = vector.extract_strided_slice %0 {offsets = [0, 64], sizes = [8, 32], strides = [1, 1]} : vector<8x96xf32> to vector<8x32xf32>
    %6 = tpu.iota {dimensions = array<i32: 0>} : vector<8x1xi32>
    %7 = tpu.iota {dimensions = array<i32: 1>} : vector<1x8xi32>
    %8 = vector.broadcast %7 : vector<1x8xi32> to vector<8x8xi32>
    %9 = vector.broadcast %6 : vector<8x1xi32> to vector<8x8xi32>
    %10 = arith.cmpi sle, %8, %9 : vector<8x8xi32>
    %11 = vector.extract_strided_slice %3 {offsets = [0, 0], sizes = [8, 8], strides = [1, 1]} : vector<8x32xf32> to vector<8x8xf32>
    %12 = vector.extract_strided_slice %4 {offsets = [0, 0], sizes = [8, 8], strides = [1, 1]} : vector<8x32xf32> to vector<8x8xf32>
    %cst_1 = arith.constant dense<0.000000e+00> : vector<8x8xf32>
    %13 = tpu.matmul %11, %12, %cst_1 {dimension_numbers = #tpu.dot_dimension_numbers<[1], [1], [0], [0], [0, 0, 1, 0], [], []>, precision = #tpu.contract_precision<fp32>} : vector<8x8xf32>, vector<8x8xf32>, vector<8x8xf32> -> vector<8x8xf32>
    %cst_2 = arith.constant -1.000000e+30 : f32
    %14 = vector.broadcast %cst_2 : f32 to vector<8x8xf32>
    %15 = arith.select %10, %13, %14 : vector<8x8xi1>, vector<8x8xf32>
    %cst_3 = arith.constant dense<0xFF800000> : vector<8xf32>
    %16 = vector.multi_reduction <maximumf>, %15, %cst_3 [1] : vector<8x8xf32> to vector<8xf32>
    %17 = vector.shape_cast %16 : vector<8xf32> to vector<8x1xf32>
    %18 = vector.broadcast %17 : vector<8x1xf32> to vector<8x8xf32>
    %19 = arith.subf %15, %18 : vector<8x8xf32>
    %20 = math.exp %19 : vector<8x8xf32>
    %cst_4 = arith.constant dense<0.000000e+00> : vector<8xf32>
    %21 = vector.multi_reduction <add>, %20, %cst_4 [1] : vector<8x8xf32> to vector<8xf32>
    %22 = vector.shape_cast %21 : vector<8xf32> to vector<8x1xf32>
    %23 = vector.extract_strided_slice %5 {offsets = [0, 0], sizes = [8, 8], strides = [1, 1]} : vector<8x32xf32> to vector<8x8xf32>
    %cst_5 = arith.constant dense<0.000000e+00> : vector<8x8xf32>
    %24 = tpu.matmul %20, %23, %cst_5 {dimension_numbers = #tpu.dot_dimension_numbers<[1], [0], [0], [1], [0, 0, 1, 1], [], []>, precision = #tpu.contract_precision<fp32>} : vector<8x8xf32>, vector<8x8xf32>, vector<8x8xf32> -> vector<8x8xf32>
    %25 = tpu.reciprocal %22 {approx = true} : vector<8x1xf32> -> vector<8x1xf32>
    %26 = vector.broadcast %25 : vector<8x1xf32> to vector<8x8xf32>
    %27 = arith.mulf %24, %26 : vector<8x8xf32>
    %28 = vector.extract_strided_slice %3 {offsets = [0, 8], sizes = [8, 8], strides = [1, 1]} : vector<8x32xf32> to vector<8x8xf32>
    %29 = vector.extract_strided_slice %4 {offsets = [0, 8], sizes = [8, 8], strides = [1, 1]} : vector<8x32xf32> to vector<8x8xf32>
    %cst_6 = arith.constant dense<0.000000e+00> : vector<8x8xf32>
    %30 = tpu.matmul %28, %29, %cst_6 {dimension_numbers = #tpu.dot_dimension_numbers<[1], [1], [0], [0], [0, 0, 1, 0], [], []>, precision = #tpu.contract_precision<fp32>} : vector<8x8xf32>, vector<8x8xf32>, vector<8x8xf32> -> vector<8x8xf32>
    %cst_7 = arith.constant -1.000000e+30 : f32
    %31 = vector.broadcast %cst_7 : f32 to vector<8x8xf32>
    %32 = arith.select %10, %30, %31 : vector<8x8xi1>, vector<8x8xf32>
    %cst_8 = arith.constant dense<0xFF800000> : vector<8xf32>
    %33 = vector.multi_reduction <maximumf>, %32, %cst_8 [1] : vector<8x8xf32> to vector<8xf32>
    %34 = vector.shape_cast %33 : vector<8xf32> to vector<8x1xf32>
    %35 = vector.broadcast %34 : vector<8x1xf32> to vector<8x8xf32>
    %36 = arith.subf %32, %35 : vector<8x8xf32>
    %37 = math.exp %36 : vector<8x8xf32>
    %cst_9 = arith.constant dense<0.000000e+00> : vector<8xf32>
    %38 = vector.multi_reduction <add>, %37, %cst_9 [1] : vector<8x8xf32> to vector<8xf32>
    %39 = vector.shape_cast %38 : vector<8xf32> to vector<8x1xf32>
    %40 = vector.extract_strided_slice %5 {offsets = [0, 8], sizes = [8, 8], strides = [1, 1]} : vector<8x32xf32> to vector<8x8xf32>
    %cst_10 = arith.constant dense<0.000000e+00> : vector<8x8xf32>
    %41 = tpu.matmul %37, %40, %cst_10 {dimension_numbers = #tpu.dot_dimension_numbers<[1], [0], [0], [1], [0, 0, 1, 1], [], []>, precision = #tpu.contract_precision<fp32>} : vector<8x8xf32>, vector<8x8xf32>, vector<8x8xf32> -> vector<8x8xf32>
    %42 = tpu.reciprocal %39 {approx = true} : vector<8x1xf32> -> vector<8x1xf32>
    %43 = vector.broadcast %42 : vector<8x1xf32> to vector<8x8xf32>
    %44 = arith.mulf %41, %43 : vector<8x8xf32>
    %45 = vector.extract_strided_slice %3 {offsets = [0, 16], sizes = [8, 8], strides = [1, 1]} : vector<8x32xf32> to vector<8x8xf32>
    %46 = vector.extract_strided_slice %4 {offsets = [0, 16], sizes = [8, 8], strides = [1, 1]} : vector<8x32xf32> to vector<8x8xf32>
    %cst_11 = arith.constant dense<0.000000e+00> : vector<8x8xf32>
    %47 = tpu.matmul %45, %46, %cst_11 {dimension_numbers = #tpu.dot_dimension_numbers<[1], [1], [0], [0], [0, 0, 1, 0], [], []>, precision = #tpu.contract_precision<fp32>} : vector<8x8xf32>, vector<8x8xf32>, vector<8x8xf32> -> vector<8x8xf32>
    %cst_12 = arith.constant -1.000000e+30 : f32
    %48 = vector.broadcast %cst_12 : f32 to vector<8x8xf32>
    %49 = arith.select %10, %47, %48 : vector<8x8xi1>, vector<8x8xf32>
    %cst_13 = arith.constant dense<0xFF800000> : vector<8xf32>
    %50 = vector.multi_reduction <maximumf>, %49, %cst_13 [1] : vector<8x8xf32> to vector<8xf32>
    %51 = vector.shape_cast %50 : vector<8xf32> to vector<8x1xf32>
    %52 = vector.broadcast %51 : vector<8x1xf32> to vector<8x8xf32>
    %53 = arith.subf %49, %52 : vector<8x8xf32>
    %54 = math.exp %53 : vector<8x8xf32>
    %cst_14 = arith.constant dense<0.000000e+00> : vector<8xf32>
    %55 = vector.multi_reduction <add>, %54, %cst_14 [1] : vector<8x8xf32> to vector<8xf32>
    %56 = vector.shape_cast %55 : vector<8xf32> to vector<8x1xf32>
    %57 = vector.extract_strided_slice %5 {offsets = [0, 16], sizes = [8, 8], strides = [1, 1]} : vector<8x32xf32> to vector<8x8xf32>
    %cst_15 = arith.constant dense<0.000000e+00> : vector<8x8xf32>
    %58 = tpu.matmul %54, %57, %cst_15 {dimension_numbers = #tpu.dot_dimension_numbers<[1], [0], [0], [1], [0, 0, 1, 1], [], []>, precision = #tpu.contract_precision<fp32>} : vector<8x8xf32>, vector<8x8xf32>, vector<8x8xf32> -> vector<8x8xf32>
    %59 = tpu.reciprocal %56 {approx = true} : vector<8x1xf32> -> vector<8x1xf32>
    %60 = vector.broadcast %59 : vector<8x1xf32> to vector<8x8xf32>
    %61 = arith.mulf %58, %60 : vector<8x8xf32>
    %62 = vector.extract_strided_slice %3 {offsets = [0, 24], sizes = [8, 8], strides = [1, 1]} : vector<8x32xf32> to vector<8x8xf32>
    %63 = vector.extract_strided_slice %4 {offsets = [0, 24], sizes = [8, 8], strides = [1, 1]} : vector<8x32xf32> to vector<8x8xf32>
    %cst_16 = arith.constant dense<0.000000e+00> : vector<8x8xf32>
    %64 = tpu.matmul %62, %63, %cst_16 {dimension_numbers = #tpu.dot_dimension_numbers<[1], [1], [0], [0], [0, 0, 1, 0], [], []>, precision = #tpu.contract_precision<fp32>} : vector<8x8xf32>, vector<8x8xf32>, vector<8x8xf32> -> vector<8x8xf32>
    %cst_17 = arith.constant -1.000000e+30 : f32
    %65 = vector.broadcast %cst_17 : f32 to vector<8x8xf32>
    %66 = arith.select %10, %64, %65 : vector<8x8xi1>, vector<8x8xf32>
    %cst_18 = arith.constant dense<0xFF800000> : vector<8xf32>
    %67 = vector.multi_reduction <maximumf>, %66, %cst_18 [1] : vector<8x8xf32> to vector<8xf32>
    %68 = vector.shape_cast %67 : vector<8xf32> to vector<8x1xf32>
    %69 = vector.broadcast %68 : vector<8x1xf32> to vector<8x8xf32>
    %70 = arith.subf %66, %69 : vector<8x8xf32>
    %71 = math.exp %70 : vector<8x8xf32>
    %cst_19 = arith.constant dense<0.000000e+00> : vector<8xf32>
    %72 = vector.multi_reduction <add>, %71, %cst_19 [1] : vector<8x8xf32> to vector<8xf32>
    %73 = vector.shape_cast %72 : vector<8xf32> to vector<8x1xf32>
    %74 = vector.extract_strided_slice %5 {offsets = [0, 24], sizes = [8, 8], strides = [1, 1]} : vector<8x32xf32> to vector<8x8xf32>
    %cst_20 = arith.constant dense<0.000000e+00> : vector<8x8xf32>
    %75 = tpu.matmul %71, %74, %cst_20 {dimension_numbers = #tpu.dot_dimension_numbers<[1], [0], [0], [1], [0, 0, 1, 1], [], []>, precision = #tpu.contract_precision<fp32>} : vector<8x8xf32>, vector<8x8xf32>, vector<8x8xf32> -> vector<8x8xf32>
    %76 = tpu.reciprocal %73 {approx = true} : vector<8x1xf32> -> vector<8x1xf32>
    %77 = vector.broadcast %76 : vector<8x1xf32> to vector<8x8xf32>
    %78 = arith.mulf %75, %77 : vector<8x8xf32>
    %79 = tpu.concatenate %27, %44, %61, %78 in 1 : vector<8x8xf32>, vector<8x8xf32>, vector<8x8xf32>, vector<8x8xf32> -> vector<8x32xf32>
    %c0_21 = arith.constant 0 : index
    %c0_22 = arith.constant 0 : index
    %80 = vector.load %arg2[%c0_21, %c0_22] : memref<8x32xf32, #tpu.memory_space<vmem>>, vector<8x32xf32>
    tpu.vector_store %arg2[%c0_21, %c0_22], %79 {strides = array<i32>} : memref<8x32xf32, #tpu.memory_space<vmem>>, vector<8x32xf32>,
    return
  }
  func.func @transform_0(%arg0: i32) -> (i32, i32) {
    %c0_i32 = arith.constant 0 : i32
    %c0_i32_0 = arith.constant 0 : i32
    return %arg0, %c0_i32 : i32, i32
  }
  func.func @transform_1(%arg0: i32) -> (i32, i32) {
    %c0_i32 = arith.constant 0 : i32
    %c0_i32_0 = arith.constant 0 : i32
    return %arg0, %c0_i32 : i32, i32
  }
}

module attributes {stable_mosaic.version = 11 : i64} {
  func.func @_ln_qkv_kernel(%arg0: i32, %arg1: i32, %arg2: memref<16x32xf32, #tpu.memory_space<vmem>>, %arg3: memref<1x32xf32, #tpu.memory_space<vmem>>, %arg4: memref<1x32xf32, #tpu.memory_space<vmem>>, %arg5: memref<32x96xf32, #tpu.memory_space<vmem>>, %arg6: memref<1x96xf32, #tpu.memory_space<vmem>>, %arg7: memref<16x96xf32, #tpu.memory_space<vmem>>, %arg8: memref<16x32xf32, #tpu.memory_space<vmem>>) attributes {dimension_semantics = [#tpu.dimension_semantics<parallel>, #tpu.dimension_semantics<arbitrary>], iteration_bounds = array<i64: 1, 1>, scalar_prefetch = 0 : i64, scratch_operands = 1 : i64, tpu.core_type = #tpu.core_type<tc>, window_params = [{transform_indices = @transform_0, window_bounds = array<i64: 16, 32>}, {pipeline_mode = #tpu.pipeline_mode<synchronous>, transform_indices = @transform_1, window_bounds = array<i64: 1, 32>}, {pipeline_mode = #tpu.pipeline_mode<synchronous>, transform_indices = @transform_2, window_bounds = array<i64: 1, 32>}, {transform_indices = @transform_3, window_bounds = array<i64: 32, 96>}, {transform_indices = @transform_4, window_bounds = array<i64: 1, 96>}, {transform_indices = @transform_5, window_bounds = array<i64: 16, 96>}]} {
    %c0_i32 = arith.constant 0 : i32
    %0 = arith.cmpi eq, %arg1, %c0_i32 : i32
    %1 = arith.extui %0 : i1 to i32
    %c0_i32_0 = arith.constant 0 : i32
    %2 = arith.cmpi ne, %1, %c0_i32_0 : i32
    scf.if %2 {
      %c0_8 = arith.constant 0 : index
      %c0_9 = arith.constant 0 : index
      %10 = vector.load %arg2[%c0_8, %c0_9] : memref<16x32xf32, #tpu.memory_space<vmem>>, vector<16x32xf32>
      %c0_10 = arith.constant 0 : index
      %c0_11 = arith.constant 0 : index
      %11 = vector.load %arg3[%c0_10, %c0_11] : memref<1x32xf32, #tpu.memory_space<vmem>>, vector<1x32xf32>
      %c0_12 = arith.constant 0 : index
      %c0_13 = arith.constant 0 : index
      %12 = vector.load %arg4[%c0_12, %c0_13] : memref<1x32xf32, #tpu.memory_space<vmem>>, vector<1x32xf32>
      %cst_14 = arith.constant dense<0.000000e+00> : vector<16xf32>
      %13 = vector.multi_reduction <add>, %10, %cst_14 [1] : vector<16x32xf32> to vector<16xf32>
      %14 = vector.shape_cast %13 : vector<16xf32> to vector<16x1xf32>
      %cst_15 = arith.constant 3.200000e+01 : f32
      %15 = vector.broadcast %cst_15 : f32 to vector<16x1xf32>
      %16 = arith.divf %14, %15 : vector<16x1xf32>
      %17 = vector.broadcast %16 : vector<16x1xf32> to vector<16x32xf32>
      %18 = arith.subf %10, %17 : vector<16x32xf32>
      %19 = arith.mulf %18, %18 : vector<16x32xf32>
      %cst_16 = arith.constant dense<0.000000e+00> : vector<16xf32>
      %20 = vector.multi_reduction <add>, %19, %cst_16 [1] : vector<16x32xf32> to vector<16xf32>
      %21 = vector.shape_cast %20 : vector<16xf32> to vector<16x1xf32>
      %cst_17 = arith.constant 3.200000e+01 : f32
      %22 = vector.broadcast %cst_17 : f32 to vector<16x1xf32>
      %23 = arith.divf %21, %22 : vector<16x1xf32>
      %cst_18 = arith.constant 9.99999974E-6 : f32
      %24 = vector.broadcast %cst_18 : f32 to vector<16x1xf32>
      %25 = arith.addf %23, %24 : vector<16x1xf32>
      %26 = math.rsqrt %25 : vector<16x1xf32>
      %27 = vector.broadcast %26 : vector<16x1xf32> to vector<16x32xf32>
      %28 = arith.mulf %18, %27 : vector<16x32xf32>
      %29 = vector.broadcast %11 : vector<1x32xf32> to vector<16x32xf32>
      %30 = arith.mulf %28, %29 : vector<16x32xf32>
      %31 = vector.broadcast %12 : vector<1x32xf32> to vector<16x32xf32>
      %32 = arith.addf %30, %31 : vector<16x32xf32>
      %c0_19 = arith.constant 0 : index
      %c0_20 = arith.constant 0 : index
      %33 = vector.load %arg8[%c0_19, %c0_20] : memref<16x32xf32, #tpu.memory_space<vmem>>, vector<16x32xf32>
      tpu.vector_store %arg8[%c0_19, %c0_20], %32 {strides = array<i32>} : memref<16x32xf32, #tpu.memory_space<vmem>>, vector<16x32xf32>,
    } else {
    }
    %c0 = arith.constant 0 : index
    %c0_1 = arith.constant 0 : index
    %3 = vector.load %arg8[%c0, %c0_1] : memref<16x32xf32, #tpu.memory_space<vmem>>, vector<16x32xf32>
    %c0_2 = arith.constant 0 : index
    %c0_3 = arith.constant 0 : index
    %4 = vector.load %arg5[%c0_2, %c0_3] : memref<32x96xf32, #tpu.memory_space<vmem>>, vector<32x96xf32>
    %cst = arith.constant dense<0.000000e+00> : vector<16x96xf32>
    %5 = tpu.matmul %3, %4, %cst {dimension_numbers = #tpu.dot_dimension_numbers<[1], [0], [0], [1], [0, 0, 1, 1], [], []>, precision = #tpu.contract_precision<fp32>} : vector<16x32xf32>, vector<32x96xf32>, vector<16x96xf32> -> vector<16x96xf32>
    %c0_4 = arith.constant 0 : index
    %c0_5 = arith.constant 0 : index
    %6 = vector.load %arg6[%c0_4, %c0_5] : memref<1x96xf32, #tpu.memory_space<vmem>>, vector<1x96xf32>
    %7 = vector.broadcast %6 : vector<1x96xf32> to vector<16x96xf32>
    %8 = arith.addf %5, %7 : vector<16x96xf32>
    %c0_6 = arith.constant 0 : index
    %c0_7 = arith.constant 0 : index
    %9 = vector.load %arg7[%c0_6, %c0_7] : memref<16x96xf32, #tpu.memory_space<vmem>>, vector<16x96xf32>
    tpu.vector_store %arg7[%c0_6, %c0_7], %8 {strides = array<i32>} : memref<16x96xf32, #tpu.memory_space<vmem>>, vector<16x96xf32>,
    return
  }
  func.func @transform_0(%arg0: i32, %arg1: i32) -> (i32, i32) {
    %c0_i32 = arith.constant 0 : i32
    %c0_i32_0 = arith.constant 0 : i32
    return %arg0, %c0_i32 : i32, i32
  }
  func.func @transform_1(%arg0: i32, %arg1: i32) -> (i32, i32) {
    %c0_i32 = arith.constant 0 : i32
    %c0_i32_0 = arith.constant 0 : i32
    %c0_i32_1 = arith.constant 0 : i32
    return %c0_i32, %c0_i32_0 : i32, i32
  }
  func.func @transform_2(%arg0: i32, %arg1: i32) -> (i32, i32) {
    %c0_i32 = arith.constant 0 : i32
    %c0_i32_0 = arith.constant 0 : i32
    %c0_i32_1 = arith.constant 0 : i32
    return %c0_i32, %c0_i32_0 : i32, i32
  }
  func.func @transform_3(%arg0: i32, %arg1: i32) -> (i32, i32) {
    %c0_i32 = arith.constant 0 : i32
    %c0_i32_0 = arith.constant 0 : i32
    return %c0_i32, %arg1 : i32, i32
  }
  func.func @transform_4(%arg0: i32, %arg1: i32) -> (i32, i32) {
    %c0_i32 = arith.constant 0 : i32
    %c0_i32_0 = arith.constant 0 : i32
    return %c0_i32, %arg1 : i32, i32
  }
  func.func @transform_5(%arg0: i32, %arg1: i32) -> (i32, i32) {
    %c0_i32 = arith.constant 0 : i32
    return %arg0, %arg1 : i32, i32
  }
}

module attributes {stable_mosaic.version = 11 : i64} {
  func.func @_proj_ln_mlp_kernel(%arg0: i32, %arg1: i32, %arg2: memref<16x32xf32, #tpu.memory_space<vmem>>, %arg3: memref<16x32xf32, #tpu.memory_space<vmem>>, %arg4: memref<32x32xf32, #tpu.memory_space<vmem>>, %arg5: memref<1x32xf32, #tpu.memory_space<vmem>>, %arg6: memref<1x32xf32, #tpu.memory_space<vmem>>, %arg7: memref<1x32xf32, #tpu.memory_space<vmem>>, %arg8: memref<32x128xf32, #tpu.memory_space<vmem>>, %arg9: memref<1x128xf32, #tpu.memory_space<vmem>>, %arg10: memref<128x32xf32, #tpu.memory_space<vmem>>, %arg11: memref<1x32xf32, #tpu.memory_space<vmem>>, %arg12: memref<16x32xf32, #tpu.memory_space<vmem>>, %arg13: memref<16x32xf32, #tpu.memory_space<vmem>>, %arg14: memref<16x32xf32, #tpu.memory_space<vmem>>, %arg15: memref<16x32xf32, #tpu.memory_space<vmem>>) attributes {dimension_semantics = [#tpu.dimension_semantics<parallel>, #tpu.dimension_semantics<arbitrary>], iteration_bounds = array<i64: 1, 1>, scalar_prefetch = 0 : i64, scratch_operands = 3 : i64, tpu.core_type = #tpu.core_type<tc>, window_params = [{transform_indices = @transform_0, window_bounds = array<i64: 16, 32>}, {transform_indices = @transform_1, window_bounds = array<i64: 16, 32>}, {pipeline_mode = #tpu.pipeline_mode<synchronous>, transform_indices = @transform_2, window_bounds = array<i64: 32, 32>}, {pipeline_mode = #tpu.pipeline_mode<synchronous>, transform_indices = @transform_3, window_bounds = array<i64: 1, 32>}, {pipeline_mode = #tpu.pipeline_mode<synchronous>, transform_indices = @transform_4, window_bounds = array<i64: 1, 32>}, {pipeline_mode = #tpu.pipeline_mode<synchronous>, transform_indices = @transform_5, window_bounds = array<i64: 1, 32>}, {transform_indices = @transform_6, window_bounds = array<i64: 32, 128>}, {transform_indices = @transform_7, window_bounds = array<i64: 1, 128>}, {transform_indices = @transform_8, window_bounds = array<i64: 128, 32>}, {pipeline_mode = #tpu.pipeline_mode<synchronous>, transform_indices = @transform_9, window_bounds = array<i64: 1, 32>}, {transform_indices = @transform_10, window_bounds = array<i64: 16, 32>}]} {
    %c0_i32 = arith.constant 0 : i32
    %0 = arith.cmpi eq, %arg1, %c0_i32 : i32
    %1 = arith.extui %0 : i1 to i32
    %c0_i32_0 = arith.constant 0 : i32
    %2 = arith.cmpi ne, %1, %c0_i32_0 : i32
    scf.if %2 {
      %c0_19 = arith.constant 0 : index
      %c0_20 = arith.constant 0 : index
      %30 = vector.load %arg3[%c0_19, %c0_20] : memref<16x32xf32, #tpu.memory_space<vmem>>, vector<16x32xf32>
      %c0_21 = arith.constant 0 : index
      %c0_22 = arith.constant 0 : index
      %31 = vector.load %arg4[%c0_21, %c0_22] : memref<32x32xf32, #tpu.memory_space<vmem>>, vector<32x32xf32>
      %cst_23 = arith.constant dense<0.000000e+00> : vector<16x32xf32>
      %32 = tpu.matmul %30, %31, %cst_23 {dimension_numbers = #tpu.dot_dimension_numbers<[1], [0], [0], [1], [0, 0, 1, 1], [], []>, precision = #tpu.contract_precision<fp32>} : vector<16x32xf32>, vector<32x32xf32>, vector<16x32xf32> -> vector<16x32xf32>
      %c0_24 = arith.constant 0 : index
      %c0_25 = arith.constant 0 : index
      %33 = vector.load %arg5[%c0_24, %c0_25] : memref<1x32xf32, #tpu.memory_space<vmem>>, vector<1x32xf32>
      %34 = vector.broadcast %33 : vector<1x32xf32> to vector<16x32xf32>
      %35 = arith.addf %32, %34 : vector<16x32xf32>
      %c0_26 = arith.constant 0 : index
      %c0_27 = arith.constant 0 : index
      %36 = vector.load %arg2[%c0_26, %c0_27] : memref<16x32xf32, #tpu.memory_space<vmem>>, vector<16x32xf32>
      %37 = arith.addf %36, %35 : vector<16x32xf32>
      %c0_28 = arith.constant 0 : index
      %c0_29 = arith.constant 0 : index
      %38 = vector.load %arg13[%c0_28, %c0_29] : memref<16x32xf32, #tpu.memory_space<vmem>>, vector<16x32xf32>
      tpu.vector_store %arg13[%c0_28, %c0_29], %37 {strides = array<i32>} : memref<16x32xf32, #tpu.memory_space<vmem>>, vector<16x32xf32>,
      %c0_30 = arith.constant 0 : index
      %c0_31 = arith.constant 0 : index
      %39 = vector.load %arg6[%c0_30, %c0_31] : memref<1x32xf32, #tpu.memory_space<vmem>>, vector<1x32xf32>
      %c0_32 = arith.constant 0 : index
      %c0_33 = arith.constant 0 : index
      %40 = vector.load %arg7[%c0_32, %c0_33] : memref<1x32xf32, #tpu.memory_space<vmem>>, vector<1x32xf32>
      %cst_34 = arith.constant dense<0.000000e+00> : vector<16xf32>
      %41 = vector.multi_reduction <add>, %37, %cst_34 [1] : vector<16x32xf32> to vector<16xf32>
      %42 = vector.shape_cast %41 : vector<16xf32> to vector<16x1xf32>
      %cst_35 = arith.constant 3.200000e+01 : f32
      %43 = vector.broadcast %cst_35 : f32 to vector<16x1xf32>
      %44 = arith.divf %42, %43 : vector<16x1xf32>
      %45 = vector.broadcast %44 : vector<16x1xf32> to vector<16x32xf32>
      %46 = arith.subf %37, %45 : vector<16x32xf32>
      %47 = arith.mulf %46, %46 : vector<16x32xf32>
      %cst_36 = arith.constant dense<0.000000e+00> : vector<16xf32>
      %48 = vector.multi_reduction <add>, %47, %cst_36 [1] : vector<16x32xf32> to vector<16xf32>
      %49 = vector.shape_cast %48 : vector<16xf32> to vector<16x1xf32>
      %cst_37 = arith.constant 3.200000e+01 : f32
      %50 = vector.broadcast %cst_37 : f32 to vector<16x1xf32>
      %51 = arith.divf %49, %50 : vector<16x1xf32>
      %cst_38 = arith.constant 9.99999974E-6 : f32
      %52 = vector.broadcast %cst_38 : f32 to vector<16x1xf32>
      %53 = arith.addf %51, %52 : vector<16x1xf32>
      %54 = math.rsqrt %53 : vector<16x1xf32>
      %55 = vector.broadcast %54 : vector<16x1xf32> to vector<16x32xf32>
      %56 = arith.mulf %46, %55 : vector<16x32xf32>
      %57 = vector.broadcast %39 : vector<1x32xf32> to vector<16x32xf32>
      %58 = arith.mulf %56, %57 : vector<16x32xf32>
      %59 = vector.broadcast %40 : vector<1x32xf32> to vector<16x32xf32>
      %60 = arith.addf %58, %59 : vector<16x32xf32>
      %c0_39 = arith.constant 0 : index
      %c0_40 = arith.constant 0 : index
      %61 = vector.load %arg14[%c0_39, %c0_40] : memref<16x32xf32, #tpu.memory_space<vmem>>, vector<16x32xf32>
      tpu.vector_store %arg14[%c0_39, %c0_40], %60 {strides = array<i32>} : memref<16x32xf32, #tpu.memory_space<vmem>>, vector<16x32xf32>,
      %cst_41 = arith.constant 0.000000e+00 : f32
      %62 = vector.broadcast %cst_41 : f32 to vector<16x32xf32>
      %c0_42 = arith.constant 0 : index
      %c0_43 = arith.constant 0 : index
      %63 = vector.load %arg15[%c0_42, %c0_43] : memref<16x32xf32, #tpu.memory_space<vmem>>, vector<16x32xf32>
      tpu.vector_store %arg15[%c0_42, %c0_43], %62 {strides = array<i32>} : memref<16x32xf32, #tpu.memory_space<vmem>>, vector<16x32xf32>,
    } else {
    }
    %c0 = arith.constant 0 : index
    %c0_1 = arith.constant 0 : index
    %3 = vector.load %arg14[%c0, %c0_1] : memref<16x32xf32, #tpu.memory_space<vmem>>, vector<16x32xf32>
    %c0_2 = arith.constant 0 : index
    %c0_3 = arith.constant 0 : index
    %4 = vector.load %arg8[%c0_2, %c0_3] : memref<32x128xf32, #tpu.memory_space<vmem>>, vector<32x128xf32>
    %cst = arith.constant dense<0.000000e+00> : vector<16x128xf32>
    %5 = tpu.matmul %3, %4, %cst {dimension_numbers = #tpu.dot_dimension_numbers<[1], [0], [0], [1], [0, 0, 1, 1], [], []>, precision = #tpu.contract_precision<fp32>} : vector<16x32xf32>, vector<32x128xf32>, vector<16x128xf32> -> vector<16x128xf32>
    %c0_4 = arith.constant 0 : index
    %c0_5 = arith.constant 0 : index
    %6 = vector.load %arg9[%c0_4, %c0_5] : memref<1x128xf32, #tpu.memory_space<vmem>>, vector<1x128xf32>
    %7 = vector.broadcast %6 : vector<1x128xf32> to vector<16x128xf32>
    %8 = arith.addf %5, %7 : vector<16x128xf32>
    %cst_6 = arith.constant 5.000000e-01 : f32
    %9 = vector.broadcast %cst_6 : f32 to vector<16x128xf32>
    %10 = arith.mulf %9, %8 : vector<16x128xf32>
    %cst_7 = arith.constant 4.471500e-02 : f32
    %11 = vector.broadcast %cst_7 : f32 to vector<16x128xf32>
    %12 = arith.mulf %11, %8 : vector<16x128xf32>
    %13 = arith.mulf %12, %8 : vector<16x128xf32>
    %14 = arith.mulf %13, %8 : vector<16x128xf32>
    %15 = arith.addf %8, %14 : vector<16x128xf32>
    %cst_8 = arith.constant 0.797884583 : f32
    %16 = vector.broadcast %cst_8 : f32 to vector<16x128xf32>
    %17 = arith.mulf %16, %15 : vector<16x128xf32>
    %18 = math.tanh %17 : vector<16x128xf32>
    %cst_9 = arith.constant 1.000000e+00 : f32
    %19 = vector.broadcast %cst_9 : f32 to vector<16x128xf32>
    %20 = arith.addf %19, %18 : vector<16x128xf32>
    %21 = arith.mulf %10, %20 : vector<16x128xf32>
    %c0_10 = arith.constant 0 : index
    %c0_11 = arith.constant 0 : index
    %22 = vector.load %arg15[%c0_10, %c0_11] : memref<16x32xf32, #tpu.memory_space<vmem>>, vector<16x32xf32>
    %c0_12 = arith.constant 0 : index
    %c0_13 = arith.constant 0 : index
    %23 = vector.load %arg10[%c0_12, %c0_13] : memref<128x32xf32, #tpu.memory_space<vmem>>, vector<128x32xf32>
    %cst_14 = arith.constant dense<0.000000e+00> : vector<16x32xf32>
    %24 = tpu.matmul %21, %23, %cst_14 {dimension_numbers = #tpu.dot_dimension_numbers<[1], [0], [0], [1], [0, 0, 1, 1], [], []>, precision = #tpu.contract_precision<fp32>} : vector<16x128xf32>, vector<128x32xf32>, vector<16x32xf32> -> vector<16x32xf32>
    %25 = arith.addf %22, %24 : vector<16x32xf32>
    %c0_15 = arith.constant 0 : index
    %c0_16 = arith.constant 0 : index
    %26 = vector.load %arg15[%c0_15, %c0_16] : memref<16x32xf32, #tpu.memory_space<vmem>>, vector<16x32xf32>
    tpu.vector_store %arg15[%c0_15, %c0_16], %25 {strides = array<i32>} : memref<16x32xf32, #tpu.memory_space<vmem>>, vector<16x32xf32>,
    %c0_i32_17 = arith.constant 0 : i32
    %27 = arith.cmpi eq, %arg1, %c0_i32_17 : i32
    %28 = arith.extui %27 : i1 to i32
    %c0_i32_18 = arith.constant 0 : i32
    %29 = arith.cmpi ne, %28, %c0_i32_18 : i32
    scf.if %29 {
      %c0_19 = arith.constant 0 : index
      %c0_20 = arith.constant 0 : index
      %30 = vector.load %arg13[%c0_19, %c0_20] : memref<16x32xf32, #tpu.memory_space<vmem>>, vector<16x32xf32>
      %c0_21 = arith.constant 0 : index
      %c0_22 = arith.constant 0 : index
      %31 = vector.load %arg15[%c0_21, %c0_22] : memref<16x32xf32, #tpu.memory_space<vmem>>, vector<16x32xf32>
      %32 = arith.addf %30, %31 : vector<16x32xf32>
      %c0_23 = arith.constant 0 : index
      %c0_24 = arith.constant 0 : index
      %33 = vector.load %arg11[%c0_23, %c0_24] : memref<1x32xf32, #tpu.memory_space<vmem>>, vector<1x32xf32>
      %34 = vector.broadcast %33 : vector<1x32xf32> to vector<16x32xf32>
      %35 = arith.addf %32, %34 : vector<16x32xf32>
      %c0_25 = arith.constant 0 : index
      %c0_26 = arith.constant 0 : index
      %36 = vector.load %arg12[%c0_25, %c0_26] : memref<16x32xf32, #tpu.memory_space<vmem>>, vector<16x32xf32>
      tpu.vector_store %arg12[%c0_25, %c0_26], %35 {strides = array<i32>} : memref<16x32xf32, #tpu.memory_space<vmem>>, vector<16x32xf32>,
    } else {
    }
    return
  }
  func.func @transform_0(%arg0: i32, %arg1: i32) -> (i32, i32) {
    %c0_i32 = arith.constant 0 : i32
    %c0_i32_0 = arith.constant 0 : i32
    return %arg0, %c0_i32 : i32, i32
  }
  func.func @transform_1(%arg0: i32, %arg1: i32) -> (i32, i32) {
    %c0_i32 = arith.constant 0 : i32
    %c0_i32_0 = arith.constant 0 : i32
    return %arg0, %c0_i32 : i32, i32
  }
  func.func @transform_2(%arg0: i32, %arg1: i32) -> (i32, i32) {
    %c0_i32 = arith.constant 0 : i32
    %c0_i32_0 = arith.constant 0 : i32
    %c0_i32_1 = arith.constant 0 : i32
    return %c0_i32, %c0_i32_0 : i32, i32
  }
  func.func @transform_3(%arg0: i32, %arg1: i32) -> (i32, i32) {
    %c0_i32 = arith.constant 0 : i32
    %c0_i32_0 = arith.constant 0 : i32
    %c0_i32_1 = arith.constant 0 : i32
    return %c0_i32, %c0_i32_0 : i32, i32
  }
  func.func @transform_4(%arg0: i32, %arg1: i32) -> (i32, i32) {
    %c0_i32 = arith.constant 0 : i32
    %c0_i32_0 = arith.constant 0 : i32
    %c0_i32_1 = arith.constant 0 : i32
    return %c0_i32, %c0_i32_0 : i32, i32
  }
  func.func @transform_5(%arg0: i32, %arg1: i32) -> (i32, i32) {
    %c0_i32 = arith.constant 0 : i32
    %c0_i32_0 = arith.constant 0 : i32
    %c0_i32_1 = arith.constant 0 : i32
    return %c0_i32, %c0_i32_0 : i32, i32
  }
  func.func @transform_6(%arg0: i32, %arg1: i32) -> (i32, i32) {
    %c0_i32 = arith.constant 0 : i32
    %c0_i32_0 = arith.constant 0 : i32
    return %c0_i32, %arg1 : i32, i32
  }
  func.func @transform_7(%arg0: i32, %arg1: i32) -> (i32, i32) {
    %c0_i32 = arith.constant 0 : i32
    %c0_i32_0 = arith.constant 0 : i32
    return %c0_i32, %arg1 : i32, i32
  }
  func.func @transform_8(%arg0: i32, %arg1: i32) -> (i32, i32) {
    %c0_i32 = arith.constant 0 : i32
    %c0_i32_0 = arith.constant 0 : i32
    return %arg1, %c0_i32 : i32, i32
  }
  func.func @transform_9(%arg0: i32, %arg1: i32) -> (i32, i32) {
    %c0_i32 = arith.constant 0 : i32
    %c0_i32_0 = arith.constant 0 : i32
    %c0_i32_1 = arith.constant 0 : i32
    return %c0_i32, %c0_i32_0 : i32, i32
  }
  func.func @transform_10(%arg0: i32, %arg1: i32) -> (i32, i32) {
    %c0_i32 = arith.constant 0 : i32
    %c0_i32_0 = arith.constant 0 : i32
    return %arg0, %c0_i32 : i32, i32
  }
}

</mosaic_0001>

<bundles_post_ra>
// kernel: block_forward.3
= control target key start
LH: loop header
LB: loop body
LE: loop exit
PB: predicated region body
PF: predicated region fallthrough
CT: control target
= control target key end

     0   :  { %vm28_vm0 = vcmask 261120   ;;  %vm622_vm1 = vcmask 785408   ;;  %s899_s0 = inlined_call_operand.vmem [shape: f32[16,32], index: 0, kind: input, shape index: {}]   ;;  %s900_s3 = inlined_call_operand.vmem [shape: f32[32,96], index: 3, kind: input, shape index: {}]   ;;  %s901_s1 = inlined_call_operand.vmem [shape: f32[1,32], index: 1, kind: input, shape index: {}]   ;;  %s902_s2 = inlined_call_operand.vmem [shape: f32[1,32], index: 2, kind: input, shape index: {}]   ;;  %s903_s4 = inlined_call_operand.vmem [shape: f32[1,96], index: 4, kind: input, shape index: {}]   ;;  %s904_s5 = inlined_call_operand.vmem [shape: f32[16,96], index: 5, kind: output, shape index: {}]  }
   0x1   :  { %v24_v0 = vld [vmem:[%s899_s0] sm:$0xff]  ;;  %v25_v1 = vld [vmem:[%s899_s0 + $0x8] sm:$0xff]  ;;  %v79_v14 = vld [vmem:[%s900_s3 + $0x18] sm:$0xff] }
   0x2   :  { %v29_v2 = vsel %vm28_vm0, %v24_v0, 0.0  ;;  %v32_v3 = vsel %vm28_vm0, %v25_v1, 0.0  ;;  %v789_v15 = vand.u32 4294901760, %v79_v14  ;;  %v78_v16 = vld [vmem:[%s900_s3 + $0x10] sm:$0xff]  ;;  %v77_v19 = vld [vmem:[%s900_s3 + $0x8] sm:$0xff]  ;;  %v76_v23 = vld [vmem:[%s900_s3] sm:$0xff] }
   0x3   :  { %30 = vadd.xlane.f32.xlu0 %v29_v2  ;;  %v797_v18 = vand.u32 4294901760, %v78_v16  ;;  %v810_v22 = vand.u32 4294901760, %v77_v19  ;;  %v825_v27 = vand.u32 4294901760, %v76_v23  ;;  %v629_v45 = vld [vmem:[%s901_s1] ss:$0 sm:$0xff] }
   0x4   :  { %v795_v17 = vsub.f32 %v79_v14, %v789_v15  ;;  %668 = vmatprep.subr.mxu0 %v789_v15  ;;  %v630_v47 = vld [vmem:[%s902_s2] ss:$0 sm:$0xff] }
   0x5   :  { %669 = vmatpush3.msra.mxu0 %v789_v15  ;;  %v808_v21 = vsub.f32 %v78_v16, %v797_v18  ;;  %v823_v26 = vsub.f32 %v77_v19, %v810_v22  ;;  %v835_v31 = vsub.f32 %v76_v23, %v825_v27 }
   0x6   :  { %v805_v20 = vand.u32 4294901760, %v795_v17  ;;  %670 = vmatprep.subr.mxu0 %v797_v18 }
   0x7   :  { %33 = vadd.xlane.f32.xlu0 %v32_v3  ;;  %671 = vmatpush3.msra.mxu0 %v797_v18  ;;  %v820_v25 = vand.u32 4294901760, %v808_v21  ;;  %v832_v30 = vand.u32 4294901760, %v823_v26  ;;  %v842_v34 = vand.u32 4294901760, %v835_v31 }
   0x8   :  { %v211_v24 = vsub.f32 %v795_v17, %v805_v20  ;;  %672 = vmatprep.subr.mxu0 %v810_v22 }
   0x9   :  { %673 = vmatpush3.msra.mxu0 %v810_v22  ;;  %v218_v29 = vsub.f32 %v808_v21, %v820_v25  ;;  %v225_v33 = vsub.f32 %v823_v26, %v832_v30  ;;  %v232_v36 = vsub.f32 %v835_v31, %v842_v34 }
   0xa   :  { %v212_v28 = vand.u32 4294901760, %v211_v24  ;;  %674 = vmatprep.subr.mxu0 %v825_v27 }
   0xb   :  { %675 = vmatpush3.msra.mxu0 %v825_v27  ;;  %v219_v32 = vand.u32 4294901760, %v218_v29  ;;  %v226_v35 = vand.u32 4294901760, %v225_v33  ;;  %v233_v37 = vand.u32 4294901760, %v232_v36 }
   0xc   :  { %679 = vmatprep.subr.mxu1 %v212_v28  ;;  %690 = vmatprep.subr.mxu0 %v795_v17 }
   0xd   :  { %680 = vmatpush3.msra.mxu1 %v212_v28 }
   0xe   :  { %681 = vmatprep.subr.mxu1 %v219_v32 }
   0xf   :  { %682 = vmatpush3.msra.mxu1 %v219_v32 }
  0x10   :  { %683 = vmatprep.subr.mxu1 %v226_v35 }
  0x11   :  { %684 = vmatpush3.msra.mxu1 %v226_v35 }
  0x12   :  { %685 = vmatprep.subr.mxu1 %v233_v37 }
  0x13   :  { %686 = vmatpush3.msra.mxu1 %v233_v37 }
  0x14   :  { %701 = vmatprep.subr.mxu1 %v789_v15 }
  0x8c   :  { %v31_v4 = vpop.xlane.xlu0 %30 }
  0x8d   :  { %v36_v5 = vmul.f32 0.03125, %v31_v4 }
  0x8f   :  { %v776_v6 = vsub.f32 %v24_v0, %v36_v5  ;;  %v631_v5 = vld [vmem:[%s903_s4] ss:$0 sm:$0xff] }
  0x90   :  { %v34_v7 = vpop.xlane.xlu0 %33 }
  0x91   :  { %v37_v8 = vmul.f32 0.03125, %v34_v7  ;;  %v40_v9 = vmul.f32 %v776_v6, %v776_v6 }
  0x93   :  { %v780_v10 = vsub.f32 %v25_v1, %v37_v8  ;;  %v42_v11 = vsel %vm28_vm0, %v40_v9, 0.0 }
  0x94   :  { %43 = vadd.xlane.f32.xlu1 %v42_v11 }
  0x95   :  { %v41_v12 = vmul.f32 %v780_v10, %v780_v10 }
  0x97   :  { %v45_v13 = vsel %vm28_vm0, %v41_v12, 0.0 }
  0x98   :  { %46 = vadd.xlane.f32.xlu1 %v45_v13 }
 0x11d   :  { %v44_v38 = vpop.xlane.xlu1 %43 }
 0x11e   :  { %v48_v39 = vmul.f32 0.03125, %v44_v38 }
 0x120   :  { %v50_v40 = vadd.f32 1e-05, %v48_v39 }
 0x121   :  { %v47_v41 = vpop.xlane.xlu1 %46 }
 0x122   :  { %734 = vrsqrt.f32 %v50_v40  ;;  %v49_v42 = vmul.f32 0.03125, %v47_v41 }
 0x124   :  { %v51_v43 = vadd.f32 1e-05, %v49_v42 }
 0x126   :  { %736 = vrsqrt.f32 %v51_v43 }
 0x12f   :  { %v735_v44 = vpop.eup %734 }
 0x130   :  { %v54_v46 = vmul.f32 %v735_v44, %v776_v6 }
 0x132   :  { %v62_v48 = vmul.f32 %v629_v45, %v54_v46 }
 0x133   :  { %v737_v49 = vpop.eup %736 }
 0x134   :  { %v70_v50 = vadd.f32 %v630_v47, %v62_v48  ;;  %v55_v51 = vmul.f32 %v737_v49, %v780_v10 }
 0x136   :  { %72 = vst.msk [vmem:[#allocation2] sm:$0xff] %vm28_vm0, %v70_v50  ;;  %v63_v52 = vmul.f32 %v629_v45, %v55_v51 }
 0x138   :  { %v71_v53 = vadd.f32 %v630_v47, %v63_v52 }
 0x13a   :  { %73 = vst.msk [vmem:[#allocation2 + $0x8] sm:$0xff] %vm28_vm0, %v71_v53 }
 0x13d   :  { %v74_v54 = vld [vmem:[#allocation2] sm:$0xff] }
 0x13e   :  { %v89_v55 = vsel %vm28_vm0, %v74_v54, 0 }
 0x13f   :  { %v163_v56 = vand.u32 4294901760, %v89_v55 }
 0x141   :  { %687 = vmatprep.mubr.f32.mxu1 %v163_v56  ;;  %v75_v57 = vld [vmem:[#allocation2 + $0x8] sm:$0xff]  ;;  %v164_v58 = vsub.f32 %v89_v55, %v163_v56 }
 0x142   :  { %v92_v59 = vsel %vm28_vm0, %v75_v57, 0 }
 0x143   :  { %v173_v60 = vand.u32 4294901760, %v92_v59  ;;  %v165_v61 = vand.u32 4294901760, %v164_v58 }
 0x145   :  { %v174_v62 = vsub.f32 %v92_v59, %v173_v60  ;;  %688 = vmatmul.mubr.f32.vlgmr.msra.gmra.mxu1 %v173_v60  ;;  %v166_v63 = vsub.f32 %v164_v58, %v165_v61 }
 0x146   :  { %702 = vmatpush3.msra.mxu1 %v789_v15  ;;  %709 = vmatprep.mubr.f32.mxu1 %v165_v61 }
 0x147   :  { %703 = vmatprep.subr.mxu1 %v797_v18  ;;  %v167_v0 = vand.u32 4294901760, %v166_v63  ;;  %v175_v1 = vand.u32 4294901760, %v174_v62 }
 0x148   :  { %704 = vmatpush3.msra.mxu1 %v797_v18 }
 0x149   :  { %705 = vmatprep.subr.mxu1 %v810_v22  ;;  %676 = vmatprep.mubr.f32.mxu0 %v167_v0  ;;  %v176_v2 = vsub.f32 %v174_v62, %v175_v1 }
 0x14a   :  { %706 = vmatpush3.msra.mxu1 %v810_v22 }
 0x14b   :  { %707 = vmatprep.subr.mxu1 %v825_v27  ;;  %v177_v3 = vand.u32 4294901760, %v176_v2 }
 0x14c   :  { %708 = vmatpush3.msra.mxu1 %v825_v27 }
 0x14d   :  { %710 = vmatmul.mubr.f32.vlgmr.msra.gmra.mxu1 %v175_v1  ;;  %723 = vmatprep.subr.mxu1 %v789_v15 }
 0x14e   :  { %677 = vmatmul.mubr.f32.vlgmr.msra.gmra.mxu0 %v177_v3  ;;  %724 = vmatpush3.msra.mxu1 %v789_v15 }
 0x14f   :  { %691 = vmatpush3.msra.mxu0 %v795_v17  ;;  %731 = vmatprep.mubr.f32.mxu1 %v163_v56 }
 0x150   :  { %692 = vmatprep.subr.mxu0 %v808_v21  ;;  %698 = vmatprep.mubr.f32.mxu0 %v164_v58 }
 0x151   :  { %725 = vmatprep.subr.mxu1 %v797_v18  ;;  %693 = vmatpush3.msra.mxu0 %v808_v21 }
 0x152   :  { %726 = vmatpush3.msra.mxu1 %v797_v18  ;;  %694 = vmatprep.subr.mxu0 %v823_v26 }
 0x153   :  { %727 = vmatprep.subr.mxu1 %v810_v22  ;;  %695 = vmatpush3.msra.mxu0 %v823_v26 }
 0x154   :  { %728 = vmatpush3.msra.mxu1 %v810_v22  ;;  %696 = vmatprep.subr.mxu0 %v835_v31 }
 0x155   :  { %729 = vmatprep.subr.mxu1 %v825_v27  ;;  %697 = vmatpush3.msra.mxu0 %v835_v31 }
 0x156   :  { %730 = vmatpush3.msra.mxu1 %v825_v27  ;;  %699 = vmatmul.mubr.f32.vlgmr.msra.gmra.mxu0 %v174_v62 }
 0x157   :  { %712 = vmatprep.subr.mxu0 %v805_v20  ;;  %732 = vmatmul.mubr.f32.vlgmr.msra.gmra.mxu1 %v173_v60 }
 0x158   :  { %713 = vmatpush3.msra.mxu0 %v805_v20  ;;  %720 = vmatprep.mubr.f32.mxu0 %v163_v56 }
 0x159   :  { %714 = vmatprep.subr.mxu0 %v820_v25 }
 0x15a   :  { %715 = vmatpush3.msra.mxu0 %v820_v25 }
 0x15b   :  { %716 = vmatprep.subr.mxu0 %v832_v30 }
 0x15c   :  { %717 = vmatpush3.msra.mxu0 %v832_v30 }
 0x15d   :  { %718 = vmatprep.subr.mxu0 %v842_v34 }
 0x15e   :  { %719 = vmatpush3.msra.mxu0 %v842_v34 }
 0x15f   :  { %721 = vmatmul.mubr.f32.vlgmr.msra.gmra.mxu0 %v173_v60 }
 0x205   :  { %v689_v6 = vpop.f32.mrf.mxu1 }
 0x207   :  { %v270_v11 = vpop.f32.mrf.mxu1 }
 0x20d   :  { %v711_v13 = vpop.f32.mrf.mxu1 }
 0x20e   :  { %v678_v4 = vpop.f32.mrf.mxu0 }
 0x20f   :  { %v180_v8 = vadd.f32 %v678_v4, %v631_v5  ;;  %v440_v18 = vpop.f32.mrf.mxu1 }
 0x210   :  { %v169_v7 = vpop.f32.mrf.mxu0 }
 0x211   :  { %v170_v9 = vadd.f32 %v631_v5, %v169_v7  ;;  %v277_v12 = vadd.f32 %v689_v6, %v180_v8 }
 0x213   :  { %v271_v16 = vadd.f32 %v270_v11, %v170_v9 }
 0x216   :  { %v700_v10 = vpop.f32.mrf.mxu0 }
 0x217   :  { %v364_v15 = vadd.f32 %v700_v10, %v277_v12  ;;  %v733_v20 = vpop.f32.mrf.mxu1 }
 0x218   :  { %v356_v14 = vpop.f32.mrf.mxu0 }
 0x219   :  { %v357_v17 = vadd.f32 %v356_v14, %v271_v16  ;;  %v449_v19 = vadd.f32 %v711_v13, %v364_v15  ;;  %v612_v27 = vpop.f32.mrf.mxu1 }
 0x21b   :  { %v441_v23 = vadd.f32 %v440_v18, %v357_v17 }
 0x21f   :  { %v722_v21 = vpop.f32.mrf.mxu0 }
 0x220   :  { %v538_v22 = vadd.f32 %v722_v21, %v449_v19 }
 0x221   :  { %v531_v24 = vpop.f32.mrf.mxu0 }
 0x222   :  { %v619_v25 = vadd.f32 %v733_v20, %v538_v22  ;;  %v532_v26 = vadd.f32 %v531_v24, %v441_v23 }
 0x224   :  { %624 = vst.msk [vmem:[%s904_s5 + $0x8] sm:$0xff] %vm622_vm1, %v619_v25  ;;  %v613_v28 = vadd.f32 %v612_v27, %v532_v26 }
 0x226   :  { %623 = vst.msk [vmem:[%s904_s5] sm:$0xff] %vm622_vm1, %v613_v28 }

// kernel: block_forward.5
= control target key start
LH: loop header
LB: loop body
LE: loop exit
PB: predicated region body
PF: predicated region fallthrough
CT: control target
= control target key end

     0   :  { %vm53_vm0 = vcmask 261120   ;;  %s3165_s0 = inlined_call_operand.vmem [shape: f32[16,32], index: 0, kind: input, shape index: {}]   ;;  %s3166_s1 = inlined_call_operand.vmem [shape: f32[16,32], index: 1, kind: input, shape index: {}]   ;;  %s3167_s2 = inlined_call_operand.vmem [shape: f32[32,32], index: 2, kind: input, shape index: {}]   ;;  %s3168_s3 = inlined_call_operand.vmem [shape: f32[1,32], index: 3, kind: input, shape index: {}]   ;;  %s3169_s4 = inlined_call_operand.vmem [shape: f32[1,32], index: 4, kind: input, shape index: {}]   ;;  %s3170_s5 = inlined_call_operand.vmem [shape: f32[1,32], index: 5, kind: input, shape index: {}]   ;;  %s3171_s6 = inlined_call_operand.vmem [shape: f32[32,128], index: 6, kind: input, shape index: {}]   ;;  %s3172_s7 = inlined_call_operand.vmem [shape: f32[1,128], index: 7, kind: input, shape index: {}]   ;;  %s3173_s8 = inlined_call_operand.vmem [shape: f32[128,32], index: 8, kind: input, shape index: {}]   ;;  %s3174_s9 = inlined_call_operand.vmem [shape: f32[1,32], index: 9, kind: input, shape index: {}]   ;;  %s3175_s10 = inlined_call_operand.hbm [shape: f32[16,32], index: 10, kind: output, shape index: {}]  }
   0x1   :  { %v45_v0 = vld [vmem:[%s3167_s2 + $0x18] sm:$0xff]  ;;  %v44_v1 = vld [vmem:[%s3167_s2 + $0x10] sm:$0xff]  ;;  %v43_v2 = vld [vmem:[%s3167_s2 + $0x8] sm:$0xff] }
   0x2   :  { %v2580_v3 = vand.u32 4294901760, %v45_v0  ;;  %v2582_v4 = vand.u32 4294901760, %v44_v1  ;;  %v2584_v5 = vand.u32 4294901760, %v43_v2  ;;  %v42_v6 = vld [vmem:[%s3167_s2] sm:$0xff]  ;;  %v41_v8 = vld [vmem:[%s3166_s1 + $0x8] sm:$0xff] }
   0x3   :  { %v40_v7 = vld [vmem:[%s3166_s1] sm:$0xff]  ;;  %v2595_v9 = vand.u32 4294901760, %v42_v6  ;;  %v58_v11 = vsel %vm53_vm0, %v41_v8, 0 }
   0x4   :  { %v55_v10 = vsel %vm53_vm0, %v40_v7, 0 }
   0x5   :  { %15 = vsyncpa [#allocation6], 0  ;;  %2136 = vmatprep.subr.mxu0 %v2580_v3  ;;  %v175_v12 = vsub.f32 %v45_v0, %v2580_v3  ;;  %v2601_v13 = vand.u32 4294901760, %v55_v10  ;;  %v182_v14 = vsub.f32 %v44_v1, %v2582_v4  ;;  %v2604_v15 = vand.u32 4294901760, %v58_v11  ;;  %v1951_v39 = vld [vmem:[%s3168_s3] ss:$0 sm:$0xff] }
   0x6   :  { %2137 = vmatpush3.msra.mxu0 %v2580_v3  ;;  %v189_v16 = vsub.f32 %v43_v2, %v2584_v5  ;;  %v196_v17 = vsub.f32 %v42_v6, %v2595_v9  ;;  %v589_v59 = vld [vmem:[%s3165_s0 + $0x8] sm:$0xff]  ;;  %v588_v63 = vld [vmem:[%s3165_s0] sm:$0xff]  ;;  %s2513_s23 = smov [#allocation5]  }
   0x7   :  { %2138 = vmatprep.subr.mxu0 %v2582_v4  ;;  %v176_v18 = vand.u32 4294901760, %v175_v12  ;;  %v130_v19 = vsub.f32 %v55_v10, %v2601_v13  ;;  %v183_v20 = vand.u32 4294901760, %v182_v14  ;;  %v140_v21 = vsub.f32 %v58_v11, %v2604_v15  ;;  %2155 = vmatprep.mubr.f32.mxu1 %v2601_v13  ;;  %s1940_s24 = sshll.u32 %s2513_s23, 4  ;;  %s1941_s24 = int_to_ptr.vmem [resolvable:$true] %s1940_s24 }
   0x8   :  { %2139 = vmatpush3.msra.mxu0 %v2582_v4  ;;  %v190_v22 = vand.u32 4294901760, %v189_v16  ;;  %v197_v23 = vand.u32 4294901760, %v196_v17  ;;  %s2490_s1 = scalar_lea.vmem %s1941_s24, 256  ;;  %p2495_p1 = scmp.lt.s32.totalorder %s1941_s24, %s1941_s24 }
   0x9   :  { %2140 = vmatprep.subr.mxu0 %v2584_v5  ;;  %v177_v24 = vsub.f32 %v175_v12, %v176_v18  ;;  %v131_v25 = vand.u32 4294901760, %v130_v19  ;;  %v184_v26 = vsub.f32 %v182_v14, %v183_v20  ;;  %v141_v27 = vand.u32 4294901760, %v140_v21  ;;  %p2491_p0 = scmp.ne.s32.totalorder %s1941_s24, %s2490_s1  ;;  %p2496_p2 = scmp.lt.s32.totalorder %s2490_s1, %s2490_s1 }
   0xa   :  { %2141 = vmatpush3.msra.mxu0 %v2584_v5  ;;  %v191_v28 = vsub.f32 %v189_v16, %v190_v22  ;;  %v198_v29 = vsub.f32 %v196_v17, %v197_v23 }
   0xb   :  { %2142 = vmatprep.subr.mxu0 %v2595_v9  ;;  %v178_v30 = vand.u32 4294901760, %v177_v24  ;;  %v132_v31 = vsub.f32 %v130_v19, %v131_v25  ;;  %v185_v32 = vand.u32 4294901760, %v184_v26  ;;  %v142_v33 = vsub.f32 %v140_v21, %v141_v27  ;;  %v645_v24 = vld [vmem:[%s3171_s6] sm:$0xff]  ;;  %p2497_p3 = por %p2496_p2, %p2495_p1 }
   0xc   :  { %2143 = vmatpush3.msra.mxu0 %v2595_v9  ;;  %v192_v36 = vand.u32 4294901760, %v191_v28  ;;  %v199_v37 = vand.u32 4294901760, %v198_v29  ;;  %v2697_v28 = vand.u32 4294901760, %v645_v24 }
   0xd   :  { %2147 = vmatprep.subr.mxu1 %v178_v30  ;;  %v133_v34 = vand.u32 4294901760, %v132_v31  ;;  %2158 = vmatprep.subr.mxu0 %v175_v12  ;;  %v143_v35 = vand.u32 4294901760, %v142_v33  ;;  %p2498_p4 = pnand %p2497_p3, %p2491_p0 }
   0xe   :  { %2148 = vmatpush3.msra.mxu1 %v178_v30 }
   0xf   :  { %2144 = vmatprep.mubr.f32.mxu0 %v133_v34  ;;  %2149 = vmatprep.subr.mxu1 %v185_v32 }
  0x10   :  { %2145 = vmatmul.mubr.f32.vlgmr.msra.gmra.mxu0 %v143_v35  ;;  %2150 = vmatpush3.msra.mxu1 %v185_v32  ;;  %v2707_v32 = vsub.f32 %v645_v24, %v2697_v28 }
  0x11   :  { %2159 = vmatpush3.msra.mxu0 %v175_v12  ;;  %2151 = vmatprep.subr.mxu1 %v192_v36 }
  0x12   :  { %2160 = vmatprep.subr.mxu0 %v182_v14  ;;  %2152 = vmatpush3.msra.mxu1 %v192_v36  ;;  %v2714_v35 = vand.u32 4294901760, %v2707_v32 }
  0x13   :  { %2161 = vmatpush3.msra.mxu0 %v182_v14  ;;  %2153 = vmatprep.subr.mxu1 %v199_v37 }
  0x14   :  { %2162 = vmatprep.subr.mxu0 %v189_v16  ;;  %2154 = vmatpush3.msra.mxu1 %v199_v37  ;;  %v801_v37 = vsub.f32 %v2707_v32, %v2714_v35 }
  0x15   :  { %2163 = vmatpush3.msra.mxu0 %v189_v16  ;;  %2156 = vmatmul.mubr.f32.vlgmr.msra.gmra.mxu1 %v2604_v15 }
  0x16   :  { %2164 = vmatprep.subr.mxu0 %v196_v17  ;;  %2169 = vmatprep.subr.mxu1 %v2580_v3 }
  0x17   :  { %2165 = vmatpush3.msra.mxu0 %v196_v17  ;;  %2166 = vmatprep.mubr.f32.mxu0 %v130_v19  ;;  %v647_v17 = vld [vmem:[%s3171_s6 + $0x10] sm:$0xff] }
  0x18   :  { %2170 = vmatpush3.msra.mxu1 %v2580_v3  ;;  %2167 = vmatmul.mubr.f32.vlgmr.msra.gmra.mxu0 %v140_v21  ;;  %v2669_v19 = vand.u32 4294901760, %v647_v17 }
  0x19   :  { %2171 = vmatprep.subr.mxu1 %v2582_v4  ;;  %2180 = vmatprep.subr.mxu0 %v176_v18 }
  0x1a   :  { %2172 = vmatpush3.msra.mxu1 %v2582_v4  ;;  %2181 = vmatpush3.msra.mxu0 %v176_v18 }
  0x1b   :  { %2173 = vmatprep.subr.mxu1 %v2584_v5  ;;  %2182 = vmatprep.subr.mxu0 %v183_v20 }
  0x1c   :  { %2174 = vmatpush3.msra.mxu1 %v2584_v5  ;;  %2183 = vmatpush3.msra.mxu0 %v183_v20  ;;  %v646_v20 = vld [vmem:[%s3171_s6 + $0x8] sm:$0xff] }
  0x1d   :  { %2175 = vmatprep.subr.mxu1 %v2595_v9  ;;  %2184 = vmatprep.subr.mxu0 %v190_v22 }
  0x1e   :  { %2176 = vmatpush3.msra.mxu1 %v2595_v9  ;;  %2177 = vmatprep.mubr.f32.mxu1 %v131_v25 }
  0x1f   :  { %2185 = vmatpush3.msra.mxu0 %v190_v22  ;;  %2178 = vmatmul.mubr.f32.vlgmr.msra.gmra.mxu1 %v141_v27  ;;  %v2680_v22 = vsub.f32 %v647_v17, %v2669_v19 }
  0x20   :  { %2186 = vmatprep.subr.mxu0 %v197_v23  ;;  %2191 = vmatprep.subr.mxu1 %v2580_v3 }
  0x21   :  { %2187 = vmatpush3.msra.mxu0 %v197_v23  ;;  %2188 = vmatprep.mubr.f32.mxu0 %v2601_v13  ;;  %v2682_v23 = vand.u32 4294901760, %v646_v20  ;;  %v2692_v26 = vand.u32 4294901760, %v2680_v22 }
  0x22   :  { %2192 = vmatpush3.msra.mxu1 %v2580_v3  ;;  %2189 = vmatmul.mubr.f32.vlgmr.msra.gmra.mxu0 %v2604_v15 }
  0x23   :  { %2193 = vmatprep.subr.mxu1 %v2582_v4  ;;  %2199 = vmatprep.mubr.f32.mxu1 %v2601_v13  ;;  %v2695_v27 = vsub.f32 %v646_v20, %v2682_v23  ;;  %v787_v30 = vsub.f32 %v2680_v22, %v2692_v26 }
  0x24   :  { %2194 = vmatpush3.msra.mxu1 %v2582_v4 }
  0x25   :  { %2195 = vmatprep.subr.mxu1 %v2584_v5  ;;  %v2704_v31 = vand.u32 4294901760, %v2695_v27  ;;  %v788_v33 = vand.u32 4294901760, %v787_v30 }
  0x26   :  { %2196 = vmatpush3.msra.mxu1 %v2584_v5 }
  0x27   :  { %2197 = vmatprep.subr.mxu1 %v2595_v9  ;;  %v794_v34 = vsub.f32 %v2695_v27, %v2704_v31 }
  0x28   :  { %2198 = vmatpush3.msra.mxu1 %v2595_v9 }
  0x29   :  { %2200 = vmatmul.mubr.f32.vlgmr.msra.gmra.mxu1 %v2604_v15  ;;  %v648_v15 = vld [vmem:[%s3171_s6 + $0x18] sm:$0xff]  ;;  %v795_v36 = vand.u32 4294901760, %v794_v34 }
  0x2a   :  { %v2661_v16 = vand.u32 4294901760, %v648_v15 }
  0x2c   :  { %v2667_v18 = vsub.f32 %v648_v15, %v2661_v16  ;;  %2202 = vmatprep.subr.mxu0 %v2661_v16 }
  0x2d   :  { %2203 = vmatpush3.msra.mxu0 %v2661_v16 }
  0x2e   :  { %v2677_v21 = vand.u32 4294901760, %v2667_v18  ;;  %2204 = vmatprep.subr.mxu0 %v2669_v19 }
  0x2f   :  { %2205 = vmatpush3.msra.mxu0 %v2669_v19 }
  0x30   :  { %v780_v25 = vsub.f32 %v2667_v18, %v2677_v21  ;;  %2206 = vmatprep.subr.mxu0 %v2682_v23 }
  0x31   :  { %2207 = vmatpush3.msra.mxu0 %v2682_v23 }
  0x32   :  { %v781_v29 = vand.u32 4294901760, %v780_v25  ;;  %2208 = vmatprep.subr.mxu0 %v2697_v28  ;;  %v1221_v25 = vld [vmem:[%s3173_s8 + $0x50] sm:$0xff] }
  0x33   :  { %2209 = vmatpush3.msra.mxu0 %v2697_v28 }
  0x34   :  { %2213 = vmatprep.subr.mxu1 %v781_v29  ;;  %2224 = vmatprep.subr.mxu0 %v2667_v18 }
  0x35   :  { %2214 = vmatpush3.msra.mxu1 %v781_v29  ;;  %v2827_v29 = vand.u32 4294901760, %v1221_v25 }
  0x36   :  { %2215 = vmatprep.subr.mxu1 %v788_v33 }
  0x37   :  { %2216 = vmatpush3.msra.mxu1 %v788_v33  ;;  %v2839_v34 = vsub.f32 %v1221_v25, %v2827_v29 }
  0x38   :  { %2217 = vmatprep.subr.mxu1 %v795_v36 }
  0x39   :  { %2218 = vmatpush3.msra.mxu1 %v795_v36 }
  0xd0   :  { %v2146_v38 = vpop.f32.mrf.mxu0 }
  0xd1   :  { %v146_v42 = vadd.f32 %v2146_v38, %v1951_v39  ;;  %v802_v38 = vand.u32 4294901760, %v801_v37  ;;  %v1219_v37 = vld [vmem:[%s3173_s8 + $0x40] sm:$0xff] }
  0xd2   :  { %v135_v40 = vpop.f32.mrf.mxu0 }
  0xd3   :  { %v136_v43 = vadd.f32 %v1951_v39, %v135_v40  ;;  %2219 = vmatprep.subr.mxu1 %v802_v38 }
  0xd4   :  { %2220 = vmatpush3.msra.mxu1 %v802_v38 }
  0xd5   :  { %v2157_v41 = vpop.f32.mrf.mxu1  ;;  %2235 = vmatprep.subr.mxu1 %v2661_v16 }
  0xd6   :  { %v243_v46 = vadd.f32 %v2157_v41, %v146_v42 }
  0xd7   :  { %v236_v44 = vpop.f32.mrf.mxu1 }
  0xd8   :  { %v2168_v45 = vpop.f32.mrf.mxu0  ;;  %v237_v48 = vadd.f32 %v236_v44, %v136_v43 }
  0xd9   :  { %v330_v50 = vadd.f32 %v2168_v45, %v243_v46  ;;  %v1952_v46 = vld [vmem:[%s3169_s4] ss:$0 sm:$0xff] }
  0xda   :  { %v322_v49 = vpop.f32.mrf.mxu0 }
  0xdb   :  { %v323_v53 = vadd.f32 %v322_v49, %v237_v48  ;;  %v1953_v48 = vld [vmem:[%s3170_s5] ss:$0 sm:$0xff] }
  0xdf   :  { %v2179_v47 = vpop.f32.mrf.mxu1 }
  0xe0   :  { %v415_v54 = vadd.f32 %v2179_v47, %v330_v50 }
  0xe1   :  { %v406_v51 = vpop.f32.mrf.mxu1 }
  0xe2   :  { %v2190_v52 = vpop.f32.mrf.mxu0  ;;  %v407_v55 = vadd.f32 %v406_v51, %v323_v53 }
  0xe3   :  { %v504_v57 = vadd.f32 %v2190_v52, %v415_v54 }
  0xe4   :  { %v497_v56 = vpop.f32.mrf.mxu0 }
  0xe5   :  { %v498_v60 = vadd.f32 %v497_v56, %v407_v55 }
  0xe9   :  { %v2201_v58 = vpop.f32.mrf.mxu1 }
  0xea   :  { %v585_v61 = vadd.f32 %v2201_v58, %v504_v57 }
  0xeb   :  { %v578_v62 = vpop.f32.mrf.mxu1 }
  0xec   :  { %v591_v0 = vadd.f32 %v589_v59, %v585_v61  ;;  %v579_v1 = vadd.f32 %v578_v62, %v498_v60 }
  0xee   :  { %593 = vst.msk [vmem:[#allocation2 + $0x8] sm:$0xff] %vm53_vm0, %v591_v0  ;;  %v590_v2 = vadd.f32 %v588_v63, %v579_v1  ;;  %v599_v4 = vsel %vm53_vm0, %v591_v0, 0.0 }
  0xf0   :  { %592 = vst.msk [vmem:[#allocation2] sm:$0xff] %vm53_vm0, %v590_v2  ;;  %v596_v3 = vsel %vm53_vm0, %v590_v2, 0.0 }
  0xf1   :  { %597 = vadd.xlane.f32.xlu0 %v596_v3 }
  0xf5   :  { %600 = vadd.xlane.f32.xlu0 %v599_v4 }
 0x17a   :  { %v598_v5 = vpop.xlane.xlu0 %597 }
 0x17b   :  { %v603_v6 = vmul.f32 0.03125, %v598_v5  ;;  %v1226_v5 = vld [vmem:[%s3173_s8 + $0x78] sm:$0xff] }
 0x17d   :  { %v605_v7 = vsub.f32 %v590_v2, %v603_v6  ;;  %v2764_v6 = vand.u32 4294901760, %v1226_v5 }
 0x17e   :  { %v601_v8 = vpop.xlane.xlu0 %600 }
 0x17f   :  { %v604_v9 = vmul.f32 0.03125, %v601_v8  ;;  %v607_v10 = vmul.f32 %v605_v7, %v605_v7  ;;  %v2770_v8 = vsub.f32 %v1226_v5, %v2764_v6 }
 0x181   :  { %v2652_v11 = vsub.f32 %v591_v0, %v604_v9  ;;  %v609_v12 = vsel %vm53_vm0, %v607_v10, 0.0  ;;  %v1224_v10 = vld [vmem:[%s3173_s8 + $0x68] sm:$0xff] }
 0x182   :  { %610 = vadd.xlane.f32.xlu1 %v609_v12 }
 0x183   :  { %v608_v13 = vmul.f32 %v2652_v11, %v2652_v11 }
 0x185   :  { %v612_v14 = vsel %vm53_vm0, %v608_v13, 0.0  ;;  %v2785_v13 = vand.u32 4294901760, %v1224_v10 }
 0x186   :  { %613 = vadd.xlane.f32.xlu1 %v612_v14  ;;  %v1223_v14 = vld [vmem:[%s3173_s8 + $0x60] sm:$0xff] }
 0x187   :  { %v2798_v17 = vsub.f32 %v1224_v10, %v2785_v13  ;;  %v1211_v10 = vld [vmem:[%s3173_s8] sm:$0xff] }
 0x20b   :  { %v611_v39 = vpop.xlane.xlu1 %610 }
 0x20c   :  { %v615_v40 = vmul.f32 0.03125, %v611_v39  ;;  %v2852_v39 = vand.u32 4294901760, %v2839_v34 }
 0x20e   :  { %v617_v41 = vadd.f32 1e-05, %v615_v40 }
 0x20f   :  { %v614_v42 = vpop.xlane.xlu1 %613 }
 0x210   :  { %2482 = vrsqrt.f32 %v617_v41  ;;  %v616_v43 = vmul.f32 0.03125, %v614_v42  ;;  %v2857_v41 = vand.u32 4294901760, %v1219_v37 }
 0x212   :  { %v618_v44 = vadd.f32 1e-05, %v616_v43  ;;  %v1218_v43 = vld [vmem:[%s3173_s8 + $0x38] sm:$0xff] }
 0x214   :  { %2484 = vrsqrt.f32 %v618_v44  ;;  %v1367_v44 = vsub.f32 %v2839_v34, %v2852_v39 }
 0x21d   :  { %v2483_v45 = vpop.eup %2482 }
 0x21e   :  { %v621_v47 = vmul.f32 %v2483_v45, %v605_v7  ;;  %v1225_v7 = vld [vmem:[%s3173_s8 + $0x70] sm:$0xff] }
 0x21f   :  { %v2772_v9 = vand.u32 4294901760, %v1225_v7 }
 0x220   :  { %v629_v49 = vmul.f32 %v1952_v46, %v621_v47  ;;  %v2874_v47 = vand.u32 4294901760, %v1218_v43 }
 0x221   :  { %v2485_v50 = vpop.eup %2484  ;;  %v2783_v12 = vsub.f32 %v1225_v7, %v2772_v9 }
 0x222   :  { %v637_v51 = vadd.f32 %v1953_v48, %v629_v49  ;;  %v622_v52 = vmul.f32 %v2485_v50, %v2652_v11  ;;  %v2780_v11 = vand.u32 4294901760, %v2770_v8  ;;  %v1217_v49 = vld [vmem:[%s3173_s8 + $0x30] sm:$0xff]  ;;  %v1368_v50 = vand.u32 4294901760, %v1367_v44 }
 0x224   :  { %639 = vst.msk [vmem:[#allocation3] sm:$0xff] %vm53_vm0, %v637_v51  ;;  %v630_v53 = vmul.f32 %v1952_v46, %v622_v52  ;;  %v1332_v15 = vsub.f32 %v2770_v8, %v2780_v11  ;;  %v2872_v46 = vsub.f32 %v1219_v37, %v2857_v41 }
 0x226   :  { %v638_v54 = vadd.f32 %v1953_v48, %v630_v53  ;;  %v1333_v20 = vand.u32 4294901760, %v1332_v15  ;;  %v2884_v52 = vand.u32 4294901760, %v2872_v46  ;;  %v2887_v53 = vsub.f32 %v1218_v43, %v2874_v47 }
 0x228   :  { %640 = vst.msk [vmem:[#allocation3 + $0x8] sm:$0xff] %vm53_vm0, %v638_v54  ;;  %3197 = vst [vmem:[#allocation9_spill] sm:$0xff] %v2884_v52  ;;  %v1216_v54 = vld [vmem:[%s3173_s8 + $0x28] sm:$0xff] }
 0x22b   :  { %v643_v55 = vld [vmem:[#allocation3] sm:$0xff] }
 0x22c   :  { %v658_v56 = vsel %vm53_vm0, %v643_v55, 0  ;;  %v1215_v55 = vld [vmem:[%s3173_s8 + $0x20] sm:$0xff] }
 0x22d   :  { %v732_v57 = vand.u32 4294901760, %v658_v56 }
 0x22f   :  { %2221 = vmatprep.mubr.f32.mxu1 %v732_v57  ;;  %v644_v58 = vld [vmem:[#allocation3 + $0x8] sm:$0xff]  ;;  %v733_v59 = vsub.f32 %v658_v56, %v732_v57 }
 0x230   :  { %v661_v60 = vsel %vm53_vm0, %v644_v58, 0  ;;  %v1214_v56 = vld [vmem:[%s3173_s8 + $0x18] sm:$0xff]  ;;  %v2901_v58 = vand.u32 4294901760, %v1216_v54 }
 0x231   :  { %v742_v61 = vand.u32 4294901760, %v661_v60  ;;  %v734_v62 = vand.u32 4294901760, %v733_v59 }
 0x233   :  { %v743_v63 = vsub.f32 %v661_v60, %v742_v61  ;;  %2222 = vmatmul.mubr.f32.vlgmr.msra.gmra.mxu1 %v742_v61  ;;  %v735_v0 = vsub.f32 %v733_v59, %v734_v62  ;;  %v2906_v60 = vand.u32 4294901760, %v1214_v56 }
 0x234   :  { %2236 = vmatpush3.msra.mxu1 %v2661_v16  ;;  %2243 = vmatprep.mubr.f32.mxu1 %v734_v62  ;;  %v1212_v62 = vld [vmem:[%s3173_s8 + $0x8] sm:$0xff] }
 0x235   :  { %2237 = vmatprep.subr.mxu1 %v2669_v19  ;;  %v736_v1 = vand.u32 4294901760, %v735_v0  ;;  %v744_v2 = vand.u32 4294901760, %v743_v63  ;;  %v1381_v0 = vsub.f32 %v2872_v46, %v2884_v52  ;;  %v2932_v7 = vsub.f32 %v1214_v56, %v2906_v60 }
 0x236   :  { %2238 = vmatpush3.msra.mxu1 %v2669_v19 }
 0x237   :  { %2239 = vmatprep.subr.mxu1 %v2682_v23  ;;  %2210 = vmatprep.mubr.f32.mxu0 %v736_v1  ;;  %v745_v3 = vsub.f32 %v743_v63, %v744_v2  ;;  %v2917_v1 = vand.u32 4294901760, %v2887_v53 }
 0x238   :  { %2240 = vmatpush3.msra.mxu1 %v2682_v23 }
 0x239   :  { %2241 = vmatprep.subr.mxu1 %v2697_v28  ;;  %v746_v4 = vand.u32 4294901760, %v745_v3  ;;  %3198 = vst [vmem:[#allocation10_spill] sm:$0xff] %v2917_v1  ;;  %v1388_v15 = vsub.f32 %v2887_v53, %v2917_v1 }
 0x23a   :  { %2242 = vmatpush3.msra.mxu1 %v2697_v28 }
 0x23b   :  { %2244 = vmatmul.mubr.f32.vlgmr.msra.gmra.mxu1 %v744_v2  ;;  %2257 = vmatprep.subr.mxu1 %v2661_v16 }
 0x23c   :  { %2211 = vmatmul.mubr.f32.vlgmr.msra.gmra.mxu0 %v746_v4  ;;  %2258 = vmatpush3.msra.mxu1 %v2661_v16  ;;  %v2795_v16 = vand.u32 4294901760, %v2783_v12  ;;  %v2926_v4 = vsub.f32 %v1216_v54, %v2901_v58 }
 0x23d   :  { %2225 = vmatpush3.msra.mxu0 %v2667_v18  ;;  %2265 = vmatprep.mubr.f32.mxu1 %v732_v57  ;;  %v2800_v18 = vand.u32 4294901760, %v1223_v14 }
 0x23e   :  { %2226 = vmatprep.subr.mxu0 %v2680_v22  ;;  %2232 = vmatprep.mubr.f32.mxu0 %v733_v59  ;;  %v2903_v59 = vand.u32 4294901760, %v1215_v55  ;;  %v2949_v25 = vand.u32 4294901760, %v2926_v4 }
 0x23f   :  { %2259 = vmatprep.subr.mxu1 %v2669_v19  ;;  %2227 = vmatpush3.msra.mxu0 %v2680_v22  ;;  %v2810_v22 = vand.u32 4294901760, %v2798_v17 }
 0x240   :  { %2260 = vmatpush3.msra.mxu1 %v2669_v19  ;;  %2228 = vmatprep.subr.mxu0 %v2695_v27  ;;  %v1222_v19 = vld [vmem:[%s3173_s8 + $0x58] sm:$0xff]  ;;  %v2929_v5 = vsub.f32 %v1215_v55, %v2903_v59  ;;  %3200 = vst [vmem:[#allocation12_spill] sm:$0xff] %v2949_v25 }
 0x241   :  { %2261 = vmatprep.subr.mxu1 %v2682_v23  ;;  %2229 = vmatpush3.msra.mxu0 %v2695_v27  ;;  %v2816_v24 = vand.u32 4294901760, %v1222_v19  ;;  %v1346_v27 = vsub.f32 %v2798_v17, %v2810_v22 }
 0x242   :  { %2262 = vmatpush3.msra.mxu1 %v2682_v23  ;;  %2230 = vmatprep.subr.mxu0 %v2707_v32  ;;  %v2813_v23 = vsub.f32 %v1223_v14, %v2800_v18  ;;  %v1382_v14 = vand.u32 4294901760, %v1381_v0 }
 0x243   :  { %2263 = vmatprep.subr.mxu1 %v2697_v28  ;;  %2231 = vmatpush3.msra.mxu0 %v2707_v32  ;;  %v2830_v30 = vsub.f32 %v1222_v19, %v2816_v24  ;;  %v1347_v32 = vand.u32 4294901760, %v1346_v27  ;;  %v2955_v27 = vand.u32 4294901760, %v2932_v7 }
 0x244   :  { %2264 = vmatpush3.msra.mxu1 %v2697_v28  ;;  %2233 = vmatmul.mubr.f32.vlgmr.msra.gmra.mxu0 %v743_v63  ;;  %v2825_v28 = vand.u32 4294901760, %v2813_v23 }
 0x245   :  { %2246 = vmatprep.subr.mxu0 %v2677_v21  ;;  %2266 = vmatmul.mubr.f32.vlgmr.msra.gmra.mxu1 %v742_v61  ;;  %v2845_v36 = vand.u32 4294901760, %v2830_v30  ;;  %3202 = vst [vmem:[#allocation14_spill] sm:$0xff] %v2955_v27 }
 0x246   :  { %2247 = vmatpush3.msra.mxu0 %v2677_v21  ;;  %2254 = vmatprep.mubr.f32.mxu0 %v732_v57  ;;  %v1339_v21 = vsub.f32 %v2783_v12, %v2795_v16  ;;  %v1353_v33 = vsub.f32 %v2813_v23, %v2825_v28  ;;  %v2899_v57 = vand.u32 4294901760, %v1217_v49 }
 0x247   :  { %2248 = vmatprep.subr.mxu0 %v2692_v26  ;;  %2303 = vmatprep.subr.mxu1 %v1333_v20  ;;  %v1360_v42 = vsub.f32 %v2830_v30, %v2845_v36 }
 0x248   :  { %2249 = vmatpush3.msra.mxu0 %v2692_v26  ;;  %v1340_v26 = vand.u32 4294901760, %v1339_v21  ;;  %2304 = vmatpush3.msra.mxu1 %v1333_v20  ;;  %v1354_v38 = vand.u32 4294901760, %v1353_v33  ;;  %v2923_v3 = vsub.f32 %v1217_v49, %v2899_v57  ;;  %v2943_v20 = vand.u32 4294901760, %v1212_v62 }
 0x249   :  { %2250 = vmatprep.subr.mxu0 %v2704_v31  ;;  %v1361_v48 = vand.u32 4294901760, %v1360_v42  ;;  %v2962_v33 = vand.u32 4294901760, %v1211_v10 }
 0x24a   :  { %2251 = vmatpush3.msra.mxu0 %v2704_v31  ;;  %v1220_v31 = vld [vmem:[%s3173_s8 + $0x48] sm:$0xff]  ;;  %2305 = vmatprep.subr.mxu1 %v1340_v26  ;;  %v2946_v21 = vand.u32 4294901760, %v2923_v3 }
 0x24b   :  { %2252 = vmatprep.subr.mxu0 %v2714_v35  ;;  %2306 = vmatpush3.msra.mxu1 %v1340_v26  ;;  %v2952_v26 = vand.u32 4294901760, %v2929_v5  ;;  %v2975_v44 = vsub.f32 %v1211_v10, %v2962_v33 }
 0x24c   :  { %2253 = vmatpush3.msra.mxu0 %v2714_v35  ;;  %v2841_v35 = vand.u32 4294901760, %v1220_v31  ;;  %2307 = vmatprep.subr.mxu1 %v1347_v32  ;;  %3199 = vst [vmem:[#allocation11_spill] sm:$0xff] %v2946_v21  ;;  %v1395_v37 = vsub.f32 %v2923_v3, %v2946_v21 }
 0x24d   :  { %2255 = vmatmul.mubr.f32.vlgmr.msra.gmra.mxu0 %v742_v61  ;;  %2268 = vmatprep.subr.mxu0 %v2764_v6  ;;  %v1213_v61 = vld [vmem:[%s3173_s8 + $0x10] sm:$0xff]  ;;  %3201 = vst [vmem:[#allocation13_spill] sm:$0xff] %v2952_v26  ;;  %v1409_v42 = vsub.f32 %v2929_v5, %v2952_v26  ;;  %v2987_v56 = vand.u32 4294901760, %v2975_v44 }
 0x24e   :  { %2269 = vmatpush3.msra.mxu0 %v2764_v6  ;;  %v2855_v40 = vsub.f32 %v1220_v31, %v2841_v35  ;;  %2308 = vmatpush3.msra.mxu1 %v1347_v32  ;;  %v2920_v2 = vand.u32 4294901760, %v1213_v61  ;;  %v1389_v31 = vand.u32 4294901760, %v1388_v15  ;;  %v2960_v32 = vsub.f32 %v1212_v62, %v2943_v20 }
 0x24f   :  { %2270 = vmatprep.subr.mxu0 %v2772_v9  ;;  %2309 = vmatprep.subr.mxu1 %v1354_v38  ;;  %v1410_v54 = vand.u32 4294901760, %v1409_v42  ;;  %3205 = vst [vmem:[#allocation17_spill] sm:$0xff] %v2987_v56  ;;  %v1437_v0 = vsub.f32 %v2975_v44, %v2987_v56 }
 0x250   :  { %2271 = vmatpush3.msra.mxu0 %v2772_v9  ;;  %v2869_v45 = vand.u32 4294901760, %v2855_v40  ;;  %2310 = vmatpush3.msra.mxu1 %v1354_v38  ;;  %v2941_v19 = vsub.f32 %v1213_v61, %v2920_v2  ;;  %v1402_v38 = vsub.f32 %v2926_v4, %v2949_v25 }
 0x251   :  { %2272 = vmatprep.subr.mxu0 %v2785_v13  ;;  %2311 = vmatprep.subr.mxu1 %v1361_v48 }
 0x252   :  { %2273 = vmatpush3.msra.mxu0 %v2785_v13  ;;  %3196 = vst [vmem:[#allocation8_spill] sm:$0xff] %v2869_v45  ;;  %v1374_v51 = vsub.f32 %v2855_v40, %v2869_v45  ;;  %2312 = vmatpush3.msra.mxu1 %v1361_v48  ;;  %v2971_v43 = vand.u32 4294901760, %v2941_v19  ;;  %v1396_v48 = vand.u32 4294901760, %v1395_v37  ;;  %v1403_v49 = vand.u32 4294901760, %v1402_v38 }
 0x253   :  { %2274 = vmatprep.subr.mxu0 %v2800_v18  ;;  %2313 = vmatprep.subr.mxu1 %v1368_v50 }
 0x254   :  { %2275 = vmatpush3.msra.mxu0 %v2800_v18  ;;  %v1375_v63 = vand.u32 4294901760, %v1374_v51  ;;  %2314 = vmatpush3.msra.mxu1 %v1368_v50  ;;  %3203 = vst [vmem:[#allocation15_spill] sm:$0xff] %v2971_v43  ;;  %v1416_v50 = vsub.f32 %v2932_v7, %v2955_v27  ;;  %v2980_v51 = vand.u32 4294901760, %v2960_v32  ;;  %v1423_v55 = vsub.f32 %v2941_v19, %v2971_v43 }
 0x255   :  { %2276 = vmatprep.subr.mxu0 %v2816_v24 }
 0x256   :  { %2277 = vmatpush3.msra.mxu0 %v2816_v24  ;;  %2315 = vmatprep.subr.mxu1 %v1375_v63  ;;  %3204 = vst [vmem:[#allocation16_spill] sm:$0xff] %v2980_v51  ;;  %v1417_v61 = vand.u32 4294901760, %v1416_v50  ;;  %v1430_v62 = vsub.f32 %v2960_v32, %v2980_v51 }
 0x257   :  { %2278 = vmatprep.subr.mxu0 %v2827_v29  ;;  %2316 = vmatpush3.msra.mxu1 %v1375_v63  ;;  %v1424_v63 = vand.u32 4294901760, %v1423_v55 }
 0x258   :  { %2279 = vmatpush3.msra.mxu0 %v2827_v29  ;;  %2317 = vmatprep.subr.mxu1 %v1382_v14  ;;  %v1431_v10 = vand.u32 4294901760, %v1430_v62 }
 0x259   :  { %2280 = vmatprep.subr.mxu0 %v2841_v35  ;;  %2318 = vmatpush3.msra.mxu1 %v1382_v14  ;;  %v1438_v14 = vand.u32 4294901760, %v1437_v0 }
 0x25a   :  { %2281 = vmatpush3.msra.mxu0 %v2841_v35  ;;  %2319 = vmatprep.subr.mxu1 %v1389_v31 }
 0x25b   :  { %2282 = vmatprep.subr.mxu0 %v2857_v41  ;;  %2320 = vmatpush3.msra.mxu1 %v1389_v31  ;;  %v1954_v31 = vld [vmem:[%s3172_s7] ss:$0 sm:$0xff] }
 0x25c   :  { %2283 = vmatpush3.msra.mxu0 %v2857_v41  ;;  %2321 = vmatprep.subr.mxu1 %v1396_v48 }
 0x25d   :  { %2284 = vmatprep.subr.mxu0 %v2874_v47  ;;  %2322 = vmatpush3.msra.mxu1 %v1396_v48 }
 0x25e   :  { %2285 = vmatpush3.msra.mxu0 %v2874_v47  ;;  %2323 = vmatprep.subr.mxu1 %v1403_v49 }
 0x25f   :  { %2286 = vmatprep.subr.mxu0 %v2899_v57  ;;  %2324 = vmatpush3.msra.mxu1 %v1403_v49 }
 0x260   :  { %2287 = vmatpush3.msra.mxu0 %v2899_v57  ;;  %2325 = vmatprep.subr.mxu1 %v1410_v54 }
 0x261   :  { %2288 = vmatprep.subr.mxu0 %v2901_v58  ;;  %2326 = vmatpush3.msra.mxu1 %v1410_v54 }
 0x262   :  { %2289 = vmatpush3.msra.mxu0 %v2901_v58  ;;  %2327 = vmatprep.subr.mxu1 %v1417_v61 }
 0x263   :  { %2290 = vmatprep.subr.mxu0 %v2903_v59  ;;  %2328 = vmatpush3.msra.mxu1 %v1417_v61 }
 0x264   :  { %2291 = vmatpush3.msra.mxu0 %v2903_v59  ;;  %2329 = vmatprep.subr.mxu1 %v1424_v63 }
 0x265   :  { %2292 = vmatprep.subr.mxu0 %v2906_v60  ;;  %2330 = vmatpush3.msra.mxu1 %v1424_v63 }
 0x266   :  { %2293 = vmatpush3.msra.mxu0 %v2906_v60  ;;  %2331 = vmatprep.subr.mxu1 %v1431_v10 }
 0x267   :  { %2294 = vmatprep.subr.mxu0 %v2920_v2  ;;  %2332 = vmatpush3.msra.mxu1 %v1431_v10 }
 0x268   :  { %2295 = vmatpush3.msra.mxu0 %v2920_v2  ;;  %2333 = vmatprep.subr.mxu1 %v1438_v14 }
 0x269   :  { %2296 = vmatprep.subr.mxu0 %v2943_v20  ;;  %2334 = vmatpush3.msra.mxu1 %v1438_v14 }
 0x26a   :  { %2297 = vmatpush3.msra.mxu0 %v2943_v20  ;;  %2373 = vmatprep.subr.mxu1 %v2764_v6 }
 0x26b   :  { %2298 = vmatprep.subr.mxu0 %v2962_v33 }
 0x26c   :  { %2299 = vmatpush3.msra.mxu0 %v2962_v33 }
 0x26d   :  { %2338 = vmatprep.subr.mxu0 %v2770_v8 }
 0x2f3   :  { %v2223_v37 = vpop.f32.mrf.mxu1 }
 0x2f5   :  { %v839_v50 = vpop.f32.mrf.mxu1 }
 0x2fb   :  { %v2245_v55 = vpop.f32.mrf.mxu1 }
 0x2fc   :  { %v2212_v15 = vpop.f32.mrf.mxu0 }
 0x2fd   :  { %v749_v42 = vadd.f32 %v2212_v15, %v1954_v31  ;;  %v1009_v10 = vpop.f32.mrf.mxu1 }
 0x2fe   :  { %v738_v38 = vpop.f32.mrf.mxu0 }
 0x2ff   :  { %v739_v48 = vadd.f32 %v1954_v31, %v738_v38  ;;  %v846_v54 = vadd.f32 %v2223_v37, %v749_v42 }
 0x301   :  { %v840_v63 = vadd.f32 %v839_v50, %v739_v48 }
 0x304   :  { %v2234_v49 = vpop.f32.mrf.mxu0 }
 0x305   :  { %v933_v62 = vadd.f32 %v2234_v49, %v846_v54  ;;  %v2267_v56 = vpop.f32.mrf.mxu1 }
 0x306   :  { %v925_v61 = vpop.f32.mrf.mxu0 }
 0x307   :  { %v926_v0 = vadd.f32 %v925_v61, %v840_v63  ;;  %v1018_v14 = vadd.f32 %v2245_v55, %v933_v62  ;;  %v1181_v1 = vpop.f32.mrf.mxu1 }
 0x309   :  { %v1010_v27 = vadd.f32 %v1009_v10, %v926_v0 }
 0x30d   :  { %v2256_v51 = vpop.f32.mrf.mxu0 }
 0x30e   :  { %v1107_v43 = vadd.f32 %v2256_v51, %v1018_v14 }
 0x30f   :  { %v1100_v26 = vpop.f32.mrf.mxu0 }
 0x310   :  { %v1188_v25 = vadd.f32 %v2267_v56, %v1107_v43  ;;  %v1101_v21 = vadd.f32 %v1100_v26, %v1010_v27 }
 0x312   :  { %v1194_v15 = vmul.f32 0.044715, %v1188_v25  ;;  %v1182_v31 = vadd.f32 %v1181_v1, %v1101_v21  ;;  %v1192_v51 = vmul.f32 0.5, %v1188_v25 }
 0x314   :  { %v1196_v38 = vmul.f32 %v1194_v15, %v1188_v25  ;;  %v1193_v52 = vmul.f32 0.044715, %v1182_v31  ;;  %v1191_v43 = vmul.f32 0.5, %v1182_v31 }
 0x316   :  { %v1198_v37 = vmul.f32 %v1196_v38, %v1188_v25  ;;  %v1195_v42 = vmul.f32 %v1193_v52, %v1182_v31  ;;  %v1955_v38 = vld [vmem:[%s3174_s9] ss:$0 sm:$0xff] }
 0x318   :  { %v1200_v45 = vadd.f32 %v1198_v37, %v1188_v25  ;;  %v1197_v49 = vmul.f32 %v1195_v42, %v1182_v31  ;;  %v1918_v42 = vld [vmem:[#allocation2] sm:$0xff] }
 0x31a   :  { %v1199_v48 = vadd.f32 %v1197_v49, %v1182_v31  ;;  %v1202_v50 = vmul.f32 0.7978846, %v1200_v45 }
 0x31c   :  { %v1201_v54 = vmul.f32 0.7978846, %v1199_v48  ;;  %2486 = vtanh.f32 %v1202_v50 }
 0x31e   :  { %2488 = vtanh.f32 %v1201_v54 }
 0x329   :  { %v2487_v55 = vpop.eup %2486 }
 0x32a   :  { %v1206_v61 = vadd.f32 1.0, %v2487_v55 }
 0x32b   :  { %v2489_v62 = vpop.eup %2488 }
 0x32c   :  { %v1205_v26 = vadd.f32 1.0, %v2489_v62  ;;  %v1208_v27 = vmul.f32 %v1206_v61, %v1192_v51 }
 0x32e   :  { %v1207_v56 = vmul.f32 %v1205_v26, %v1191_v43  ;;  %v3006_v1 = vand.u32 4294901760, %v1208_v27 }
 0x330   :  { %v3008_v21 = vand.u32 4294901760, %v1207_v56  ;;  %v3011_v52 = vsub.f32 %v1208_v27, %v3006_v1 }
 0x332   :  { %2335 = vmatprep.mubr.f32.mxu1 %v3008_v21  ;;  %v1309_v45 = vsub.f32 %v1207_v56, %v3008_v21  ;;  %v1320_v63 = vand.u32 4294901760, %v3011_v52 }
 0x333   :  { %2336 = vmatmul.mubr.f32.vlgmr.msra.gmra.mxu1 %v3006_v1 }
 0x334   :  { %2374 = vmatpush3.msra.mxu1 %v2764_v6  ;;  %v1310_v25 = vand.u32 4294901760, %v1309_v45  ;;  %v1321_v0 = vsub.f32 %v3011_v52, %v1320_v63 }
 0x335   :  { %2375 = vmatprep.subr.mxu1 %v2772_v9 }
 0x336   :  { %2376 = vmatpush3.msra.mxu1 %v2772_v9  ;;  %2405 = vmatprep.mubr.f32.mxu1 %v1310_v25  ;;  %v1311_v10 = vsub.f32 %v1309_v45, %v1310_v25  ;;  %v1322_v15 = vand.u32 4294901760, %v1321_v0 }
 0x337   :  { %2377 = vmatprep.subr.mxu1 %v2785_v13 }
 0x338   :  { %2378 = vmatpush3.msra.mxu1 %v2785_v13  ;;  %v1312_v14 = vand.u32 4294901760, %v1311_v10 }
 0x339   :  { %2379 = vmatprep.subr.mxu1 %v2800_v18 }
 0x33a   :  { %2380 = vmatpush3.msra.mxu1 %v2800_v18  ;;  %2300 = vmatprep.mubr.f32.mxu0 %v1312_v14 }
 0x33b   :  { %2381 = vmatprep.subr.mxu1 %v2816_v24  ;;  %2301 = vmatmul.mubr.f32.vlgmr.msra.gmra.mxu0 %v1322_v15 }
 0x33c   :  { %2339 = vmatpush3.msra.mxu0 %v2770_v8  ;;  %2382 = vmatpush3.msra.mxu1 %v2816_v24  ;;  %v3207_v8 = vld [vmem:[#allocation9_spill] sm:$0xff] }
 0x33d   :  { %2340 = vmatprep.subr.mxu0 %v2783_v12  ;;  %2370 = vmatprep.mubr.f32.mxu0 %v1309_v45 }
 0x33e   :  { %2383 = vmatprep.subr.mxu1 %v2827_v29  ;;  %2341 = vmatpush3.msra.mxu0 %v2783_v12  ;;  %v3210_v12 = vld [vmem:[#allocation12_spill] sm:$0xff] }
 0x33f   :  { %2384 = vmatpush3.msra.mxu1 %v2827_v29  ;;  %2342 = vmatprep.subr.mxu0 %v2798_v17 }
 0x340   :  { %2385 = vmatprep.subr.mxu1 %v2841_v35  ;;  %2343 = vmatpush3.msra.mxu0 %v2798_v17  ;;  %v3213_v17 = vld [vmem:[#allocation15_spill] sm:$0xff] }
 0x341   :  { %2386 = vmatpush3.msra.mxu1 %v2841_v35  ;;  %2344 = vmatprep.subr.mxu0 %v2813_v23 }
 0x342   :  { %2387 = vmatprep.subr.mxu1 %v2857_v41  ;;  %2345 = vmatpush3.msra.mxu0 %v2813_v23  ;;  %v2512_v23 = vmov 0.0  }
 0x343   :  { %2388 = vmatpush3.msra.mxu1 %v2857_v41  ;;  %2346 = vmatprep.subr.mxu0 %v2830_v30  ;;  %642 = vst.msk [vmem:[#allocation4 + $0x8] sm:$0xff] %vm53_vm0, %v2512_v23  ;;  %641 = vst.msk [vmem:[#allocation4] sm:$0xff] %vm53_vm0, %v2512_v23 }
 0x344   :  { %2389 = vmatprep.subr.mxu1 %v2874_v47  ;;  %2347 = vmatpush3.msra.mxu0 %v2830_v30 }
 0x345   :  { %2390 = vmatpush3.msra.mxu1 %v2874_v47  ;;  %2348 = vmatprep.subr.mxu0 %v2839_v34 }
 0x346   :  { %2391 = vmatprep.subr.mxu1 %v2899_v57  ;;  %2349 = vmatpush3.msra.mxu0 %v2839_v34 }
 0x347   :  { %2392 = vmatpush3.msra.mxu1 %v2899_v57  ;;  %2350 = vmatprep.subr.mxu0 %v2855_v40 }
 0x348   :  { %2393 = vmatprep.subr.mxu1 %v2901_v58  ;;  %2351 = vmatpush3.msra.mxu0 %v2855_v40 }
 0x349   :  { %2394 = vmatpush3.msra.mxu1 %v2901_v58  ;;  %2352 = vmatprep.subr.mxu0 %v2872_v46 }
 0x34a   :  { %2395 = vmatprep.subr.mxu1 %v2903_v59  ;;  %2353 = vmatpush3.msra.mxu0 %v2872_v46 }
 0x34b   :  { %2396 = vmatpush3.msra.mxu1 %v2903_v59  ;;  %2354 = vmatprep.subr.mxu0 %v2887_v53 }
 0x34c   :  { %2397 = vmatprep.subr.mxu1 %v2906_v60  ;;  %2355 = vmatpush3.msra.mxu0 %v2887_v53 }
 0x34d   :  { %2398 = vmatpush3.msra.mxu1 %v2906_v60  ;;  %2356 = vmatprep.subr.mxu0 %v2923_v3 }
 0x34e   :  { %2399 = vmatprep.subr.mxu1 %v2920_v2  ;;  %2357 = vmatpush3.msra.mxu0 %v2923_v3 }
 0x34f   :  { %2400 = vmatpush3.msra.mxu1 %v2920_v2  ;;  %2358 = vmatprep.subr.mxu0 %v2926_v4 }
 0x350   :  { %2401 = vmatprep.subr.mxu1 %v2943_v20  ;;  %2359 = vmatpush3.msra.mxu0 %v2926_v4 }
 0x351   :  { %2402 = vmatpush3.msra.mxu1 %v2943_v20  ;;  %2360 = vmatprep.subr.mxu0 %v2929_v5 }
 0x352   :  { %2403 = vmatprep.subr.mxu1 %v2962_v33  ;;  %2361 = vmatpush3.msra.mxu0 %v2929_v5 }
 0x353   :  { %2404 = vmatpush3.msra.mxu1 %v2962_v33  ;;  %2362 = vmatprep.subr.mxu0 %v2932_v7 }
 0x354   :  { %2406 = vmatmul.mubr.f32.vlgmr.msra.gmra.mxu1 %v1320_v63  ;;  %2443 = vmatprep.subr.mxu1 %v2764_v6 }
 0x355   :  { %2363 = vmatpush3.msra.mxu0 %v2932_v7  ;;  %2444 = vmatpush3.msra.mxu1 %v2764_v6  ;;  %v3206_v6 = vld [vmem:[#allocation8_spill] sm:$0xff] }
 0x356   :  { %2475 = vmatprep.mubr.f32.mxu1 %v3008_v21  ;;  %2364 = vmatprep.subr.mxu0 %v2941_v19 }
 0x357   :  { %2445 = vmatprep.subr.mxu1 %v2772_v9  ;;  %2365 = vmatpush3.msra.mxu0 %v2941_v19  ;;  %v1209_v19 = vld [vmem:[#allocation4] sm:$0xff] }
 0x358   :  { %2446 = vmatpush3.msra.mxu1 %v2772_v9  ;;  %2366 = vmatprep.subr.mxu0 %v2960_v32  ;;  %v3208_v9 = vld [vmem:[#allocation10_spill] sm:$0xff] }
 0x359   :  { %2447 = vmatprep.subr.mxu1 %v2785_v13  ;;  %2367 = vmatpush3.msra.mxu0 %v2960_v32 }
 0x35a   :  { %2448 = vmatpush3.msra.mxu1 %v2785_v13  ;;  %2368 = vmatprep.subr.mxu0 %v2975_v44  ;;  %v3211_v13 = vld [vmem:[#allocation13_spill] sm:$0xff] }
 0x35b   :  { %2449 = vmatprep.subr.mxu1 %v2800_v18  ;;  %2369 = vmatpush3.msra.mxu0 %v2975_v44  ;;  %v1919_v44 = vld [vmem:[#allocation2 + $0x8] sm:$0xff] }
 0x35c   :  { %2450 = vmatpush3.msra.mxu1 %v2800_v18  ;;  %2371 = vmatmul.mubr.f32.vlgmr.msra.gmra.mxu0 %v3011_v52  ;;  %v3214_v18 = vld [vmem:[#allocation16_spill] sm:$0xff] }
 0x35d   :  { %2408 = vmatprep.subr.mxu0 %v2780_v11  ;;  %2451 = vmatprep.subr.mxu1 %v2816_v24 }
 0x35e   :  { %2409 = vmatpush3.msra.mxu0 %v2780_v11  ;;  %2440 = vmatprep.mubr.f32.mxu0 %v3008_v21  ;;  %v3209_v11 = vld [vmem:[#allocation11_spill] sm:$0xff] }
 0x35f   :  { %2452 = vmatpush3.msra.mxu1 %v2816_v24  ;;  %2410 = vmatprep.subr.mxu0 %v2795_v16 }
 0x360   :  { %2453 = vmatprep.subr.mxu1 %v2827_v29  ;;  %2411 = vmatpush3.msra.mxu0 %v2795_v16  ;;  %v3212_v16 = vld [vmem:[#allocation14_spill] sm:$0xff] }
 0x361   :  { %2454 = vmatpush3.msra.mxu1 %v2827_v29  ;;  %2412 = vmatprep.subr.mxu0 %v2810_v22 }
 0x362   :  { %2455 = vmatprep.subr.mxu1 %v2841_v35  ;;  %2413 = vmatpush3.msra.mxu0 %v2810_v22  ;;  %v3215_v22 = vld [vmem:[#allocation17_spill] sm:$0xff] }
 0x363   :  { %2456 = vmatpush3.msra.mxu1 %v2841_v35  ;;  %2414 = vmatprep.subr.mxu0 %v2825_v28 }
 0x364   :  { %2457 = vmatprep.subr.mxu1 %v2857_v41  ;;  %2415 = vmatpush3.msra.mxu0 %v2825_v28 }
 0x365   :  { %2458 = vmatpush3.msra.mxu1 %v2857_v41  ;;  %2416 = vmatprep.subr.mxu0 %v2845_v36 }
 0x366   :  { %2459 = vmatprep.subr.mxu1 %v2874_v47  ;;  %2417 = vmatpush3.msra.mxu0 %v2845_v36 }
 0x367   :  { %2460 = vmatpush3.msra.mxu1 %v2874_v47  ;;  %2418 = vmatprep.subr.mxu0 %v2852_v39 }
 0x368   :  { %2461 = vmatprep.subr.mxu1 %v2899_v57  ;;  %2419 = vmatpush3.msra.mxu0 %v2852_v39 }
 0x369   :  { %2462 = vmatpush3.msra.mxu1 %v2899_v57  ;;  %2420 = vmatprep.subr.mxu0 %v3206_v6 }
 0x36a   :  { %2463 = vmatprep.subr.mxu1 %v2901_v58  ;;  %2421 = vmatpush3.msra.mxu0 %v3206_v6 }
 0x36b   :  { %2464 = vmatpush3.msra.mxu1 %v2901_v58  ;;  %2422 = vmatprep.subr.mxu0 %v3207_v8 }
 0x36c   :  { %2465 = vmatprep.subr.mxu1 %v2903_v59  ;;  %2423 = vmatpush3.msra.mxu0 %v3207_v8 }
 0x36d   :  { %2466 = vmatpush3.msra.mxu1 %v2903_v59  ;;  %2424 = vmatprep.subr.mxu0 %v3208_v9 }
 0x36e   :  { %2467 = vmatprep.subr.mxu1 %v2906_v60  ;;  %2425 = vmatpush3.msra.mxu0 %v3208_v9 }
 0x36f   :  { %2468 = vmatpush3.msra.mxu1 %v2906_v60  ;;  %2426 = vmatprep.subr.mxu0 %v3209_v11 }
 0x370   :  { %2469 = vmatprep.subr.mxu1 %v2920_v2  ;;  %2427 = vmatpush3.msra.mxu0 %v3209_v11 }
 0x371   :  { %2470 = vmatpush3.msra.mxu1 %v2920_v2  ;;  %2428 = vmatprep.subr.mxu0 %v3210_v12  ;;  %v1210_v2 = vld [vmem:[#allocation4 + $0x8] sm:$0xff] }
 0x372   :  { %2471 = vmatprep.subr.mxu1 %v2943_v20  ;;  %2429 = vmatpush3.msra.mxu0 %v3210_v12 }
 0x373   :  { %2472 = vmatpush3.msra.mxu1 %v2943_v20  ;;  %2430 = vmatprep.subr.mxu0 %v3211_v13 }
 0x374   :  { %2473 = vmatprep.subr.mxu1 %v2962_v33  ;;  %2431 = vmatpush3.msra.mxu0 %v3211_v13 }
 0x375   :  { %2474 = vmatpush3.msra.mxu1 %v2962_v33  ;;  %2432 = vmatprep.subr.mxu0 %v3212_v16 }
 0x376   :  { %2476 = vmatmul.mubr.f32.vlgmr.msra.gmra.mxu1 %v3006_v1  ;;  %2433 = vmatpush3.msra.mxu0 %v3212_v16 }
 0x377   :  { %2434 = vmatprep.subr.mxu0 %v3213_v17 }
 0x378   :  { %2435 = vmatpush3.msra.mxu0 %v3213_v17 }
 0x379   :  { %2436 = vmatprep.subr.mxu0 %v3214_v18 }
 0x37a   :  { %2437 = vmatpush3.msra.mxu0 %v3214_v18 }
 0x37b   :  { %2438 = vmatprep.subr.mxu0 %v3215_v22 }
 0x37c   :  { %2439 = vmatpush3.msra.mxu0 %v3215_v22 }
 0x37d   :  { %2441 = vmatmul.mubr.f32.vlgmr.msra.gmra.mxu0 %v3006_v1 }
 0x3f3   :  { %v2337_v28 = vpop.f32.mrf.mxu1 }
 0x3f5   :  { %v1475_v34 = vpop.f32.mrf.mxu1 }
 0x3fb   :  { %v2302_v24 = vpop.f32.mrf.mxu0 }
 0x3fc   :  { %v1482_v35 = vadd.f32 %v2337_v28, %v2302_v24 }
 0x3fd   :  { %v1314_v29 = vpop.f32.mrf.mxu0 }
 0x3fe   :  { %v1476_v40 = vadd.f32 %v1475_v34, %v1314_v29 }
 0x414   :  { %v2407_v36 = vpop.f32.mrf.mxu1 }
 0x416   :  { %v1681_v47 = vpop.f32.mrf.mxu1 }
 0x41c   :  { %v2372_v30 = vpop.f32.mrf.mxu0 }
 0x41d   :  { %v1593_v41 = vadd.f32 %v2372_v30, %v1482_v35 }
 0x41e   :  { %v1585_v39 = vpop.f32.mrf.mxu0 }
 0x41f   :  { %v1586_v46 = vadd.f32 %v1585_v39, %v1476_v40  ;;  %v1690_v53 = vadd.f32 %v2407_v36, %v1593_v41 }
 0x421   :  { %v1682_v60 = vadd.f32 %v1681_v47, %v1586_v46 }
 0x436   :  { %v2477_v57 = vpop.f32.mrf.mxu1 }
 0x438   :  { %v1901_v7 = vpop.f32.mrf.mxu1 }
 0x43d   :  { %v2442_v58 = vpop.f32.mrf.mxu0 }
 0x43e   :  { %v1815_v59 = vadd.f32 %v2442_v58, %v1690_v53 }
 0x43f   :  { %v1808_v3 = vpop.f32.mrf.mxu0 }
 0x440   :  { %v1908_v4 = vadd.f32 %v2477_v57, %v1815_v59  ;;  %v1809_v5 = vadd.f32 %v1808_v3, %v1682_v60 }
 0x442   :  { %v1912_v20 = vadd.f32 %v1908_v4, %v1210_v2  ;;  %v1902_v32 = vadd.f32 %v1901_v7, %v1809_v5 }
 0x444   :  { %1914 = vst.msk [vmem:[#allocation4 + $0x8] sm:$0xff] %vm53_vm0, %v1912_v20  ;;  %v1911_v33 = vadd.f32 %v1902_v32, %v1209_v19 }
 0x446   :  { %1913 = vst.msk [vmem:[#allocation4] sm:$0xff] %vm53_vm0, %v1911_v33 }
 0x44b   :  { %v1921_v31 = vld [vmem:[#allocation4 + $0x8] sm:$0xff] }
 0x44c   :  { %v1923_v37 = vadd.f32 %v1921_v31, %v1919_v44 }
 0x44d   :  { %v1920_v49 = vld [vmem:[#allocation4] sm:$0xff] }
 0x44e   :  { %v1922_v48 = vadd.f32 %v1920_v49, %v1918_v42  ;;  %v1932_v50 = vadd.f32 %v1955_v38, %v1923_v37 }
 0x450   :  { %v1931_v54 = vadd.f32 %v1955_v38, %v1922_v48  ;;  %1934 = vst.msk [vmem:[#allocation5 + $0x8] sm:$0xff] %vm53_vm0, %v1932_v50 }
 0x452   :  { %1933 = vst.msk [vmem:[#allocation5] sm:$0xff] %vm53_vm0, %v1931_v54 }
 0x453   :  { %2501 = shalt.err (!%p2498_p4)
}
 0x454   :  { %s2514_s9 = smov 128   ;;  %s2515_s2 = smov 8  }
 0x455   :  { %1946 = dma.vmem_to_hbm [thread:$0]  %s1941_s24, 256, %s3175_s10, [#allocation6], %s2514_s9, %s2514_s9, %s2515_s2  }
 0x456   :  { %2510 = dma.done.wait [#allocation6], 256  }
 0x457   :  { %2511 = vsyncadd [#allocation6], 4294967040 }
 0x458   :  { %1950 = vsyncpa [#allocation6], 1 }

// kernel: block_forward.4
= control target key start
LH: loop header
LB: loop body
LE: loop exit
PB: predicated region body
PF: predicated region fallthrough
CT: control target
= control target key end

     0   :  { %s4283_s6 = smov 0   ;;  %s4545_s0 = inlined_call_operand.vmem [shape: f32[16,96], index: 0, kind: input, shape index: {}]   ;;  %s4546_s1 = inlined_call_operand.vmem [shape: f32[16,32], index: 1, kind: output, shape index: {}]  }
   0x1 LB: > { %s3864_s7 = sadd.s32 4294967295, %s4255_s6   ;;  %p3868_p0 = scmp.ge.s32.totalorder %s4255_s6, 1  ;;  %s4255_s6 = sphi %s4283_s6, %s11_s6  }
   0x2   : > { %p86_p1 = scmp.lt.s32.totalorder %s4255_s6, 3 }
   0x4   : > { %p87_p2 = pnand %p3868_p0, %p86_p1 }
   0x5   : > { %p104_p3 = scmp.lt.s32.totalorder (!%p87_p2), %s3864_s7, 1  ;;  %s4259_s12 = smov (!%p87_p2), 96  }
   0x6   : > { %90 = sbr.rel (%p87_p2) target bundleno = 1998 (0x7ce), region = 24  ;;  %s4260_s13 = smov (!%p87_p2), 64  }
   0x7   : > { %s4261_s14 = smov (!%p87_p2), 88   ;;  %s4262_s15 = smov (!%p87_p2), 120  }
   0x8   : > { %s4263_s16 = smov (!%p87_p2), 56   ;;  %s4264_s17 = smov (!%p87_p2), 112  }
   0x9   : > { %s4265_s18 = smov (!%p87_p2), 80   ;;  %s4266_s19 = smov (!%p87_p2), 48  }
   0xa   : > { %s4267_s20 = smov (!%p87_p2), 72   ;;  %s4268_s21 = smov (!%p87_p2), 104  }
   0xb   : > { %v4257_v0 = vmov 0.0   ;;  %vm4258_vm0 = vmmov 0   ;;  %s4548_s7 = smov (!%p104_p3, %s3864_s7), 1  ;;  %vm122_vm1 = vcmask 64512   ;;  %v114_v22 = vlaneseq  ;;  %s4269_s22 = smov 40  }
   0xc   : > { %3969 = vmatprep.subr.mxu0 %v4257_v0  ;;  %3971 = vmatprep.mubr.msk.f32.mxu0 %vm4258_vm0, %v4257_v0  ;;  %s3869_s8 = sshll.u32 %s4548_s7, 3  ;;  %s4270_s23 = smov 8   ;;  %vm3805_vm3 = vcmask 130048   ;;  %vm3807_vm4 = vcmask 195584   ;;  %vm3809_vm5 = vcmask 261120  }
   0xd   : > { %3974 = vmatprep.subr.mxu1 %v4257_v0  ;;  %3976 = vmatprep.mubr.msk.f32.mxu1 %vm4258_vm0, %v4257_v0  ;;  %s107_s11 = scalar_lea.vmem %s4545_s0, %s3869_s8  ;;  %v4335_v28 = vshrl.u32 %v114_v22, 7  ;;  %v4337_v29 = vand.u32 127, %v114_v22  ;;  %s4271_s24 = smov 16  }
   0xe   : > { %v4305_v1 = vld [vmem:[%s107_s11] sm:$0xff]  ;;  %s4272_s25 = smov 24   ;;  %s111_s28 = scalar_lea.vmem %s4546_s1, %s3869_s8 }
   0xf   : > { %120 = vrot.lane.b32.xlu0 %v4305_v1, %s4259_s12  ;;  %v4309_v2 = vmul.f32 0.35355338, %v4305_v1  ;;  %584 = vrot.lane.b32.xlu1 %v4305_v1, %s4260_s13  ;;  %vm118_vm2 = vcmp.le.s32.totalorder %v4337_v29, %v4335_v28 }
  0x11   : > { %v124_v3 = vsel %vm122_vm1, %v4309_v2, 0 }
  0x12   : > { %v194_v4 = vand.u32 4294901760, %v124_v3 }
  0x13   : > { %1040 = vrot.lane.b32.xlu1 %v4305_v1, %s4261_s14 }
  0x14   : > { %v195_v5 = vsub.f32 %v124_v3, %v194_v4 }
  0x16   : > { %v196_v6 = vand.u32 4294901760, %v195_v5 }
  0x17   : > { %1038 = vrot.lane.b32.xlu1 %v4309_v2, %s4262_s15 }
  0x18   : > { %v197_v7 = vsub.f32 %v195_v5, %v196_v6 }
  0x1a   : > { %v198_v11 = vand.u32 4294901760, %v197_v7 }
  0x81   : > { %v121_v8 = vpop.permute.xlu0 %120  ;;  %v585_v38 = vpop.permute.xlu1 %584 }
  0x82   : > { %v126_v9 = vsel %vm122_vm1, %v121_v8, 0  ;;  %v621_v39 = vand.u32 4294901760, %v585_v38 }
  0x83   : > { %v159_v10 = vand.u32 4294901760, %v126_v9 }
  0x84   : > { %v698_v40 = vsub.f32 %v585_v38, %v621_v39 }
  0x85   : > { %v236_v12 = vsub.f32 %v126_v9, %v159_v10  ;;  %3970 = vmatpush3.xpose.msra.mxu0 %v159_v10  ;;  %v1041_v47 = vpop.permute.xlu1 %1040 }
  0x86   : > { %3979 = vmatprep.subr.mxu0 %v4257_v0  ;;  %v699_v41 = vand.u32 4294901760, %v698_v40  ;;  %v1044_v48 = vsel %vm122_vm1, %v1041_v47, 0 }
  0x87   : > { %v237_v13 = vand.u32 4294901760, %v236_v12  ;;  %v1077_v49 = vand.u32 4294901760, %v1044_v48 }
  0x88   : > { %3972 = vmatmul.mubr.f32.vlgmr.msra.gmra.mxu0 %v198_v11  ;;  %v700_v42 = vsub.f32 %v698_v40, %v699_v41 }
  0x89   : > { %3980 = vmatpush3.xpose.msra.mxu0 %v236_v12  ;;  %3981 = vmatprep.mubr.msk.f32.mxu0 %vm4258_vm0, %v4257_v0  ;;  %v238_v14 = vsub.f32 %v236_v12, %v237_v13  ;;  %v1154_v50 = vsub.f32 %v1044_v48, %v1077_v49  ;;  %v1039_v52 = vpop.permute.xlu1 %1038 }
  0x8a   : > { %3989 = vmatprep.subr.mxu0 %v4257_v0  ;;  %v701_v43 = vand.u32 4294901760, %v700_v42  ;;  %v1042_v56 = vsel %vm122_vm1, %v1039_v52, 0 }
  0x8b   : > { %v239_v15 = vand.u32 4294901760, %v238_v14  ;;  %v1155_v53 = vand.u32 4294901760, %v1154_v50  ;;  %v1112_v60 = vand.u32 4294901760, %v1042_v56 }
  0x8c   : > { %3982 = vmatmul.mubr.f32.vlgmr.msra.gmra.mxu0 %v195_v5 }
  0x8d   : > { %3975 = vmatpush3.xpose.msra.mxu1 %v239_v15  ;;  %3990 = vmatpush3.xpose.msra.mxu0 %v237_v13  ;;  %v1156_v58 = vsub.f32 %v1154_v50, %v1155_v53  ;;  %v1113_v63 = vsub.f32 %v1042_v56, %v1112_v60 }
  0x8e   : > { %3984 = vmatprep.subr.mxu1 %v4257_v0  ;;  %3991 = vmatprep.mubr.msk.f32.mxu0 %vm4258_vm0, %v4257_v0 }
  0x8f   : > { %3999 = vmatprep.subr.mxu0 %v4257_v0  ;;  %v1157_v62 = vand.u32 4294901760, %v1156_v58 }
  0x90   : > { %3977 = vmatmul.mubr.f32.vlgmr.msra.gmra.mxu1 %v194_v4  ;;  %3992 = vmatmul.mubr.f32.vlgmr.msra.gmra.mxu0 %v194_v4 }
  0x91   : > { %3985 = vmatpush3.xpose.msra.mxu1 %v159_v10  ;;  %3986 = vmatprep.mubr.msk.f32.mxu1 %vm4258_vm0, %v4257_v0 }
  0x92   : > { %3994 = vmatprep.subr.mxu1 %v4257_v0  ;;  %4001 = vmatprep.mubr.msk.f32.mxu0 %vm4258_vm0, %v4257_v0 }
  0x93   : > { %4000 = vmatpush3.msra.mxu0 %v621_v39 }
  0x94   : > { %3987 = vmatmul.mubr.f32.vlgmr.msra.gmra.mxu1 %v196_v6  ;;  %4009 = vmatprep.subr.mxu0 %v4257_v0 }
  0x95   : > { %3995 = vmatpush3.xpose.msra.mxu1 %v159_v10  ;;  %3996 = vmatprep.mubr.msk.f32.mxu1 %vm4258_vm0, %v4257_v0 }
  0x96   : > { %4004 = vmatprep.subr.mxu1 %v4257_v0 }
  0x98   : > { %3997 = vmatmul.mubr.f32.vlgmr.msra.gmra.mxu1 %v194_v4  ;;  %v1114_v4 = vand.u32 4294901760, %v1113_v63 }
  0x99   : > { %4006 = vmatprep.mubr.msk.f32.mxu1 %vm4258_vm0, %v4257_v0  ;;  %4005 = vmatpush3.msra.mxu1 %v701_v43 }
  0x9a   : > { %4014 = vmatprep.subr.mxu1 %v4257_v0  ;;  %v1115_v5 = vsub.f32 %v1113_v63, %v1114_v4 }
  0x9c   : > { %v1116_v6 = vand.u32 4294901760, %v1115_v5 }
 0x148   : > { %v200_v16 = vpop.f32.mrf.mxu0 }
 0x14a   : > { %v3973_v17 = vpop.f32.mrf.mxu0 }
 0x14c   : > { %v350_v18 = vpop.f32.mrf.mxu0 }
 0x14e   : > { %v3983_v19 = vpop.f32.mrf.mxu0 }
 0x150   : > { %v276_v20 = vpop.f32.mrf.mxu1  ;;  %v498_v21 = vpop.f32.mrf.mxu0 }
 0x151   : > { %v277_v23 = vadd.f32 %v276_v20, %v200_v16 }
 0x152   : > { %v3978_v24 = vpop.f32.mrf.mxu1  ;;  %v3993_v25 = vpop.f32.mrf.mxu0 }
 0x153   : > { %v351_v26 = vadd.f32 %v350_v18, %v277_v23 }
 0x154   : > { %v424_v27 = vpop.f32.mrf.mxu1 }
 0x155   : > { %v425_v30 = vadd.f32 %v424_v27, %v351_v26 }
 0x156   : > { %v3988_v31 = vpop.f32.mrf.mxu1 }
 0x157   : > { %v499_v32 = vadd.f32 %v498_v21, %v425_v30 }
 0x158   : > { %v570_v33 = vpop.f32.mrf.mxu1 }
 0x159   : > { %v571_v34 = vadd.f32 %v570_v33, %v499_v32 }
 0x15a   : > { %v3998_v35 = vpop.f32.mrf.mxu1 }
 0x15b   : > { %v574_v36 = vsel %vm118_vm2, %v571_v34, -1e+30 }
 0x15c   : > { %v575_v37 = vsel %vm122_vm1, %v574_v36, -inf }
 0x15d   : > { %576 = vmax.xlane.f32.xlu0 %v575_v37 }
 0x173   : > { %1502 = vrot.lane.b32.xlu0 %v4305_v1, %s4263_s16 }
 0x177   : > { %1956 = vrot.lane.b32.xlu0 %v4309_v2, %s4264_s17 }
 0x1e6   : > { %v577_v44 = vpop.xlane.xlu0 %576 }
 0x1e7   : > { %v578_v45 = vsub.f32 %v574_v36, %v577_v44 }
 0x1e9   : > { %v579_v46 = vmul.f32 1.442695, %v578_v45 }
 0x1ea   : > { %v1503_v45 = vpop.permute.xlu0 %1502 }
 0x1eb   : > { %4233 = vpow2.f32 %v579_v46  ;;  %v1539_v46 = vand.u32 4294901760, %v1503_v45 }
 0x1ed   : > { %v1616_v47 = vsub.f32 %v1503_v45, %v1539_v46 }
 0x1ef   : > { %v1617_v48 = vand.u32 4294901760, %v1616_v47 }
 0x1f8   : > { %v4348_v51 = vpop.eup %4233 }
 0x1f9   : > { %v588_v54 = vsel %vm122_vm1, %v4348_v51, 0 }
 0x1fa   : > { %v656_v55 = vand.u32 4294901760, %v588_v54 }
 0x1fc   : > { %v657_v57 = vsub.f32 %v588_v54, %v656_v55  ;;  %4007 = vmatmul.mubr.f32.vlgmr.msra.gmra.mxu1 %v656_v55 }
 0x1fd   : > { %4015 = vmatpush3.msra.mxu1 %v621_v39  ;;  %4016 = vmatprep.mubr.msk.f32.mxu1 %vm4258_vm0, %v4257_v0 }
 0x1fe   : > { %4024 = vmatprep.subr.mxu1 %v4257_v0  ;;  %v658_v59 = vand.u32 4294901760, %v657_v57 }
 0x200   : > { %4017 = vmatmul.mubr.f32.vlgmr.msra.gmra.mxu1 %v658_v59  ;;  %v659_v61 = vsub.f32 %v657_v57, %v658_v59 }
 0x201   : > { %4025 = vmatpush3.msra.mxu1 %v621_v39  ;;  %4026 = vmatprep.mubr.msk.f32.mxu1 %vm4258_vm0, %v4257_v0 }
 0x202   : > { %4034 = vmatprep.subr.mxu1 %v4257_v0  ;;  %v660_v3 = vand.u32 4294901760, %v659_v61 }
 0x204   : > { %4002 = vmatmul.mubr.f32.vlgmr.msra.gmra.mxu0 %v660_v3  ;;  %4027 = vmatmul.mubr.f32.vlgmr.msra.gmra.mxu1 %v656_v55 }
 0x205   : > { %4010 = vmatpush3.msra.mxu0 %v698_v40  ;;  %4035 = vmatpush3.xpose.msra.mxu1 %v1157_v62 }
 0x206   : > { %4011 = vmatprep.mubr.msk.f32.mxu0 %vm4258_vm0, %v4257_v0  ;;  %4019 = vmatprep.subr.mxu0 %v4257_v0 }
 0x207   : > { %4036 = vmatprep.mubr.msk.f32.mxu1 %vm4258_vm0, %v4257_v0  ;;  %4044 = vmatprep.subr.mxu1 %v4257_v0 }
 0x208   : > { %4012 = vmatmul.mubr.f32.vlgmr.msra.gmra.mxu0 %v657_v57  ;;  %4037 = vmatmul.mubr.f32.vlgmr.msra.gmra.mxu1 %v1112_v60 }
 0x209   : > { %4020 = vmatpush3.msra.mxu0 %v699_v41  ;;  %4045 = vmatpush3.xpose.msra.mxu1 %v1077_v49 }
 0x20a   : > { %4021 = vmatprep.mubr.msk.f32.mxu0 %vm4258_vm0, %v4257_v0  ;;  %4029 = vmatprep.subr.mxu0 %v4257_v0 }
 0x20b   : > { %4046 = vmatprep.mubr.msk.f32.mxu1 %vm4258_vm0, %v4257_v0  ;;  %4054 = vmatprep.subr.mxu1 %v4257_v0 }
 0x20c   : > { %4022 = vmatmul.mubr.f32.vlgmr.msra.gmra.mxu0 %v656_v55  ;;  %4047 = vmatmul.mubr.f32.vlgmr.msra.gmra.mxu1 %v1114_v4 }
 0x20d   : > { %4030 = vmatpush3.xpose.msra.mxu0 %v1077_v49  ;;  %4055 = vmatpush3.xpose.msra.mxu1 %v1077_v49  ;;  %v1618_v49 = vsub.f32 %v1616_v47, %v1617_v48 }
 0x20e   : > { %4031 = vmatprep.mubr.msk.f32.mxu0 %vm4258_vm0, %v4257_v0  ;;  %4039 = vmatprep.subr.mxu0 %v4257_v0 }
 0x20f   : > { %4056 = vmatprep.mubr.msk.f32.mxu1 %vm4258_vm0, %v4257_v0  ;;  %4064 = vmatprep.subr.mxu1 %v4257_v0 }
 0x210   : > { %4032 = vmatmul.mubr.f32.vlgmr.msra.gmra.mxu0 %v1116_v6  ;;  %4057 = vmatmul.mubr.f32.vlgmr.msra.gmra.mxu1 %v1112_v60 }
 0x211   : > { %4040 = vmatpush3.xpose.msra.mxu0 %v1154_v50  ;;  %4041 = vmatprep.mubr.msk.f32.mxu0 %vm4258_vm0, %v4257_v0  ;;  %v1619_v50 = vand.u32 4294901760, %v1618_v49 }
 0x212   : > { %4049 = vmatprep.subr.mxu0 %v4257_v0  ;;  %4066 = vmatprep.mubr.msk.f32.mxu1 %vm4258_vm0, %v4257_v0 }
 0x213   : > { %4065 = vmatpush3.msra.mxu1 %v1619_v50 }
 0x214   : > { %4042 = vmatmul.mubr.f32.vlgmr.msra.gmra.mxu0 %v1113_v63  ;;  %4074 = vmatprep.subr.mxu1 %v4257_v0 }
 0x215   : > { %4050 = vmatpush3.xpose.msra.mxu0 %v1155_v53  ;;  %4051 = vmatprep.mubr.msk.f32.mxu0 %vm4258_vm0, %v4257_v0 }
 0x216   : > { %4059 = vmatprep.subr.mxu0 %v4257_v0 }
 0x218   : > { %4052 = vmatmul.mubr.f32.vlgmr.msra.gmra.mxu0 %v1112_v60  ;;  %v1957_v60 = vpop.permute.xlu0 %1956 }
 0x219   : > { %4061 = vmatprep.mubr.msk.f32.mxu0 %vm4258_vm0, %v4257_v0  ;;  %4060 = vmatpush3.msra.mxu0 %v1539_v46  ;;  %v1960_v3 = vsel %vm122_vm1, %v1957_v60, 0 }
 0x21a   : > { %4069 = vmatprep.subr.mxu0 %v4257_v0 }
 0x2bc   : > { %v738_v7 = vpop.f32.mrf.mxu1 }
 0x2be   : > { %v4008_v8 = vpop.f32.mrf.mxu1 }
 0x2c0   : > { %v886_v9 = vpop.f32.mrf.mxu1 }
 0x2c2   : > { %v4018_v10 = vpop.f32.mrf.mxu1 }
 0x2c4   : > { %v662_v11 = vpop.f32.mrf.mxu0  ;;  %v1032_v12 = vpop.f32.mrf.mxu1 }
 0x2c5   : > { %v739_v13 = vadd.f32 %v738_v7, %v662_v11  ;;  %v2030_v7 = vand.u32 4294901760, %v1960_v3 }
 0x2c6   : > { %v4003_v14 = vpop.f32.mrf.mxu0  ;;  %v4028_v15 = vpop.f32.mrf.mxu1 }
 0x2c7   : > { %v2031_v10 = vsub.f32 %v1960_v3, %v2030_v7 }
 0x2c8   : > { %v812_v16 = vpop.f32.mrf.mxu0  ;;  %v1194_v17 = vpop.f32.mrf.mxu1 }
 0x2c9   : > { %v813_v18 = vadd.f32 %v812_v16, %v739_v13 }
 0x2ca   : > { %v4013_v19 = vpop.f32.mrf.mxu0  ;;  %v4038_v20 = vpop.f32.mrf.mxu1 }
 0x2cb   : > { %v887_v21 = vadd.f32 %v886_v9, %v813_v18 }
 0x2cc   : > { %v960_v22 = vpop.f32.mrf.mxu0  ;;  %v1342_v23 = vpop.f32.mrf.mxu1 }
 0x2cd   : > { %v961_v24 = vadd.f32 %v960_v22, %v887_v21 }
 0x2ce   : > { %v4023_v25 = vpop.f32.mrf.mxu0  ;;  %v4048_v26 = vpop.f32.mrf.mxu1 }
 0x2cf   : > { %v4389_v27 = vadd.f32 %v1032_v12, %v961_v24  ;;  %v2032_v12 = vand.u32 4294901760, %v2031_v10 }
 0x2d0   : > { %v1118_v30 = vpop.f32.mrf.mxu0  ;;  %v1488_v31 = vpop.f32.mrf.mxu1 }
 0x2d1   : > { %v1195_v34 = vadd.f32 %v1194_v17, %v1118_v30  ;;  %v2033_v13 = vsub.f32 %v2031_v10, %v2032_v12 }
 0x2d2   : > { %v4033_v32 = vpop.f32.mrf.mxu0  ;;  %v4058_v33 = vpop.f32.mrf.mxu1 }
 0x2d3   : > { %v2034_v14 = vand.u32 4294901760, %v2033_v13 }
 0x2d4   : > { %v1268_v35 = vpop.f32.mrf.mxu0 }
 0x2d5   : > { %v1269_v36 = vadd.f32 %v1268_v35, %v1195_v34 }
 0x2d6   : > { %v4043_v37 = vpop.f32.mrf.mxu0 }
 0x2d7   : > { %v1343_v38 = vadd.f32 %v1342_v23, %v1269_v36 }
 0x2d8   : > { %v1416_v39 = vpop.f32.mrf.mxu0 }
 0x2d9   : > { %v1417_v40 = vadd.f32 %v1416_v39, %v1343_v38 }
 0x2da   : > { %v4053_v41 = vpop.f32.mrf.mxu0 }
 0x2db   : > { %v1489_v42 = vadd.f32 %v1488_v31, %v1417_v40 }
 0x2dd   : > { %v1492_v43 = vsel %vm118_vm2, %v1489_v42, -1e+30 }
 0x2de   : > { %v1493_v44 = vsel %vm122_vm1, %v1492_v43, -inf }
 0x2df   : > { %1494 = vmax.xlane.f32.xlu1 %v1493_v44 }
 0x2f0   : > { %1958 = vrot.lane.b32.xlu1 %v4305_v1, %s4265_s18 }
 0x2f4   : > { %2420 = vrot.lane.b32.xlu1 %v4305_v1, %s4266_s19 }
 0x2f8   : > { %2876 = vrot.lane.b32.xlu1 %v4305_v1, %s4267_s20 }
 0x2fc   : > { %2874 = vrot.lane.b32.xlu1 %v4309_v2, %s4268_s21 }
 0x368   : > { %v1495_v52 = vpop.xlane.xlu1 %1494 }
 0x369   : > { %v1496_v53 = vsub.f32 %v1492_v43, %v1495_v52 }
 0x36b   : > { %v1497_v54 = vmul.f32 1.442695, %v1496_v53 }
 0x36c   : > { %v1959_v55 = vpop.permute.xlu1 %1958 }
 0x36d   : > { %4235 = vpow2.f32 %v1497_v54  ;;  %v1962_v56 = vsel %vm122_vm1, %v1959_v55, 0 }
 0x36e   : > { %v1995_v57 = vand.u32 4294901760, %v1962_v56 }
 0x370   : > { %v2072_v58 = vsub.f32 %v1962_v56, %v1995_v57  ;;  %v2421_v54 = vpop.permute.xlu1 %2420 }
 0x371   : > { %v2457_v55 = vand.u32 4294901760, %v2421_v54 }
 0x372   : > { %v2073_v61 = vand.u32 4294901760, %v2072_v58 }
 0x373   : > { %v2534_v56 = vsub.f32 %v2421_v54, %v2457_v55 }
 0x374   : > { %v2074_v5 = vsub.f32 %v2072_v58, %v2073_v61  ;;  %v2877_v3 = vpop.permute.xlu1 %2876 }
 0x376   : > { %v2075_v9 = vand.u32 4294901760, %v2074_v5 }
 0x37a   : > { %v4399_v59 = vpop.eup %4235 }
 0x37b   : > { %v1506_v62 = vsel %vm122_vm1, %v4399_v59, 0 }
 0x37c   : > { %v1574_v63 = vand.u32 4294901760, %v1506_v62 }
 0x37e   : > { %v1575_v4 = vsub.f32 %v1506_v62, %v1574_v63  ;;  %4067 = vmatmul.mubr.f32.vlgmr.msra.gmra.mxu1 %v1574_v63 }
 0x37f   : > { %4075 = vmatpush3.msra.mxu1 %v1539_v46  ;;  %4076 = vmatprep.mubr.msk.f32.mxu1 %vm4258_vm0, %v4257_v0 }
 0x380   : > { %4084 = vmatprep.subr.mxu1 %v4257_v0  ;;  %v1576_v6 = vand.u32 4294901760, %v1575_v4 }
 0x382   : > { %4077 = vmatmul.mubr.f32.vlgmr.msra.gmra.mxu1 %v1576_v6  ;;  %v1577_v8 = vsub.f32 %v1575_v4, %v1576_v6 }
 0x383   : > { %4085 = vmatpush3.msra.mxu1 %v1539_v46  ;;  %4086 = vmatprep.mubr.msk.f32.mxu1 %vm4258_vm0, %v4257_v0 }
 0x384   : > { %4094 = vmatprep.subr.mxu1 %v4257_v0  ;;  %v1578_v11 = vand.u32 4294901760, %v1577_v8  ;;  %v2875_v8 = vpop.permute.xlu1 %2874 }
 0x386   : > { %4062 = vmatmul.mubr.f32.vlgmr.msra.gmra.mxu0 %v1578_v11  ;;  %4087 = vmatmul.mubr.f32.vlgmr.msra.gmra.mxu1 %v1574_v63 }
 0x387   : > { %4070 = vmatpush3.msra.mxu0 %v1616_v47  ;;  %4095 = vmatpush3.xpose.msra.mxu1 %v2075_v9 }
 0x388   : > { %4071 = vmatprep.mubr.msk.f32.mxu0 %vm4258_vm0, %v4257_v0  ;;  %4079 = vmatprep.subr.mxu0 %v4257_v0 }
 0x389   : > { %4096 = vmatprep.mubr.msk.f32.mxu1 %vm4258_vm0, %v4257_v0  ;;  %4104 = vmatprep.subr.mxu1 %v4257_v0 }
 0x38a   : > { %4072 = vmatmul.mubr.f32.vlgmr.msra.gmra.mxu0 %v1575_v4  ;;  %4097 = vmatmul.mubr.f32.vlgmr.msra.gmra.mxu1 %v2030_v7  ;;  %v2880_v4 = vsel %vm122_vm1, %v2877_v3, 0 }
 0x38b   : > { %4080 = vmatpush3.msra.mxu0 %v1617_v48  ;;  %4105 = vmatpush3.xpose.msra.mxu1 %v1995_v57  ;;  %v2913_v5 = vand.u32 4294901760, %v2880_v4 }
 0x38c   : > { %4081 = vmatprep.mubr.msk.f32.mxu0 %vm4258_vm0, %v4257_v0  ;;  %4089 = vmatprep.subr.mxu0 %v4257_v0 }
 0x38d   : > { %4106 = vmatprep.mubr.msk.f32.mxu1 %vm4258_vm0, %v4257_v0  ;;  %4114 = vmatprep.subr.mxu1 %v4257_v0  ;;  %v4451_v6 = vsub.f32 %v2880_v4, %v2913_v5 }
 0x38e   : > { %4082 = vmatmul.mubr.f32.vlgmr.msra.gmra.mxu0 %v1574_v63  ;;  %4107 = vmatmul.mubr.f32.vlgmr.msra.gmra.mxu1 %v2032_v12  ;;  %v2878_v12 = vsel %vm122_vm1, %v2875_v8, 0 }
 0x38f   : > { %4090 = vmatpush3.xpose.msra.mxu0 %v1995_v57  ;;  %4115 = vmatpush3.xpose.msra.mxu1 %v1995_v57  ;;  %v2535_v57 = vand.u32 4294901760, %v2534_v56  ;;  %v2991_v9 = vand.u32 4294901760, %v4451_v6 }
 0x390   : > { %4091 = vmatprep.mubr.msk.f32.mxu0 %vm4258_vm0, %v4257_v0  ;;  %4099 = vmatprep.subr.mxu0 %v4257_v0 }
 0x391   : > { %4116 = vmatprep.mubr.msk.f32.mxu1 %vm4258_vm0, %v4257_v0  ;;  %4124 = vmatprep.subr.mxu1 %v4257_v0 }
 0x392   : > { %4092 = vmatmul.mubr.f32.vlgmr.msra.gmra.mxu0 %v2034_v14  ;;  %4117 = vmatmul.mubr.f32.vlgmr.msra.gmra.mxu1 %v2030_v7  ;;  %v2992_v14 = vsub.f32 %v4451_v6, %v2991_v9 }
 0x393   : > { %4100 = vmatpush3.xpose.msra.mxu0 %v2072_v58  ;;  %4101 = vmatprep.mubr.msk.f32.mxu0 %vm4258_vm0, %v4257_v0  ;;  %v2536_v58 = vsub.f32 %v2534_v56, %v2535_v57 }
 0x394   : > { %4109 = vmatprep.subr.mxu0 %v4257_v0  ;;  %4126 = vmatprep.mubr.msk.f32.mxu1 %vm4258_vm0, %v4257_v0 }
 0x395   : > { %v2537_v60 = vand.u32 4294901760, %v2536_v58 }
 0x396   : > { %4102 = vmatmul.mubr.f32.vlgmr.msra.gmra.mxu0 %v2031_v10 }
 0x397   : > { %4110 = vmatpush3.xpose.msra.mxu0 %v2073_v61  ;;  %4111 = vmatprep.mubr.msk.f32.mxu0 %vm4258_vm0, %v4257_v0 }
 0x398   : > { %4119 = vmatprep.subr.mxu0 %v4257_v0  ;;  %4125 = vmatpush3.msra.mxu1 %v2537_v60 }
 0x399   : > { %4134 = vmatprep.subr.mxu1 %v4257_v0 }
 0x39a   : > { %4112 = vmatmul.mubr.f32.vlgmr.msra.gmra.mxu0 %v2030_v7 }
 0x39b   : > { %4121 = vmatprep.mubr.msk.f32.mxu0 %vm4258_vm0, %v4257_v0  ;;  %4120 = vmatpush3.msra.mxu0 %v2457_v55 }
 0x39c   : > { %4129 = vmatprep.subr.mxu0 %v4257_v0 }
 0x43e   : > { %v1656_v15 = vpop.f32.mrf.mxu1 }
 0x440   : > { %v4068_v16 = vpop.f32.mrf.mxu1 }
 0x442   : > { %v1804_v17 = vpop.f32.mrf.mxu1 }
 0x444   : > { %v4078_v18 = vpop.f32.mrf.mxu1 }
 0x446   : > { %v1580_v19 = vpop.f32.mrf.mxu0  ;;  %v1950_v20 = vpop.f32.mrf.mxu1 }
 0x447   : > { %v1657_v21 = vadd.f32 %v1656_v15, %v1580_v19 }
 0x448   : > { %v4063_v22 = vpop.f32.mrf.mxu0  ;;  %v4088_v23 = vpop.f32.mrf.mxu1 }
 0x44a   : > { %v1730_v24 = vpop.f32.mrf.mxu0  ;;  %v2112_v25 = vpop.f32.mrf.mxu1 }
 0x44b   : > { %v1731_v26 = vadd.f32 %v1730_v24, %v1657_v21 }
 0x44c   : > { %v4073_v30 = vpop.f32.mrf.mxu0  ;;  %v4098_v31 = vpop.f32.mrf.mxu1 }
 0x44d   : > { %v1805_v32 = vadd.f32 %v1804_v17, %v1731_v26  ;;  %v2948_v17 = vand.u32 4294901760, %v2878_v12 }
 0x44e   : > { %v1878_v33 = vpop.f32.mrf.mxu0  ;;  %v2260_v34 = vpop.f32.mrf.mxu1 }
 0x44f   : > { %v1879_v35 = vadd.f32 %v1878_v33, %v1805_v32  ;;  %v2949_v21 = vsub.f32 %v2878_v12, %v2948_v17 }
 0x450   : > { %v4083_v36 = vpop.f32.mrf.mxu0  ;;  %v4108_v2 = vpop.f32.mrf.mxu1 }
 0x451   : > { %v4441_v37 = vadd.f32 %v1950_v20, %v1879_v35  ;;  %v2993_v20 = vand.u32 4294901760, %v2992_v14  ;;  %v2950_v24 = vand.u32 4294901760, %v2949_v21 }
 0x452   : > { %v2036_v38 = vpop.f32.mrf.mxu0  ;;  %v2406_v39 = vpop.f32.mrf.mxu1 }
 0x453   : > { %v2113_v42 = vadd.f32 %v2112_v25, %v2036_v38  ;;  %v2951_v26 = vsub.f32 %v2949_v21, %v2950_v24 }
 0x454   : > { %v4093_v40 = vpop.f32.mrf.mxu0  ;;  %v4118_v41 = vpop.f32.mrf.mxu1 }
 0x455   : > { %v2952_v31 = vand.u32 4294901760, %v2951_v26 }
 0x456   : > { %v2186_v43 = vpop.f32.mrf.mxu0 }
 0x457   : > { %v2187_v44 = vadd.f32 %v2186_v43, %v2113_v42 }
 0x458   : > { %v4103_v45 = vpop.f32.mrf.mxu0 }
 0x459   : > { %v2261_v46 = vadd.f32 %v2260_v34, %v2187_v44 }
 0x45a   : > { %v2334_v47 = vpop.f32.mrf.mxu0 }
 0x45b   : > { %v2335_v48 = vadd.f32 %v2334_v47, %v2261_v46 }
 0x45c   : > { %v4113_v49 = vpop.f32.mrf.mxu0 }
 0x45d   : > { %v2407_v50 = vadd.f32 %v2406_v39, %v2335_v48 }
 0x45f   : > { %v2410_v52 = vsel %vm118_vm2, %v2407_v50, -1e+30 }
 0x460   : > { %v2411_v53 = vsel %vm122_vm1, %v2410_v52, -inf }
 0x461   : > { %2412 = vmax.xlane.f32.xlu0 %v2411_v53 }
 0x477   : > { %3338 = vrot.lane.b32.xlu0 %v4305_v1, %s4269_s22 }
 0x4ea   : > { %v2413_v61 = vpop.xlane.xlu0 %2412 }
 0x4eb   : > { %v2414_v62 = vsub.f32 %v2410_v52, %v2413_v61 }
 0x4ed   : > { %v2415_v63 = vmul.f32 1.442695, %v2414_v62 }
 0x4ee   : > { %v3339_v15 = vpop.permute.xlu0 %3338 }
 0x4ef   : > { %4237 = vpow2.f32 %v2415_v63  ;;  %v4463_v18 = vand.u32 4294901760, %v3339_v15 }
 0x4f1   : > { %v4469_v23 = vsub.f32 %v3339_v15, %v4463_v18 }
 0x4f3   : > { %v3453_v25 = vand.u32 4294901760, %v4469_v23 }
 0x4f5   : > { %v3454_v30 = vsub.f32 %v4469_v23, %v3453_v25 }
 0x4f7   : > { %v3455_v32 = vand.u32 4294901760, %v3454_v30 }
 0x4fc   : > { %v4238_v7 = vpop.eup %4237 }
 0x4fd   : > { %v2417_v1 = vsel %vm122_vm1, %v4238_v7, 0.0  ;;  %v2424_v10 = vsel %vm122_vm1, %v4238_v7, 0 }
 0x4fe   : > { %2418 = vadd.xlane.f32.xlu0 %v2417_v1  ;;  %v2492_v11 = vand.u32 4294901760, %v2424_v10  ;;  %v1499_v1 = vsel %vm122_vm1, %v4399_v59, 0.0  ;;  %v581_v59 = vsel %vm122_vm1, %v4348_v51, 0.0 }
 0x500   : > { %v2493_v13 = vsub.f32 %v2424_v10, %v2492_v11  ;;  %4127 = vmatmul.mubr.f32.vlgmr.msra.gmra.mxu1 %v2492_v11 }
 0x501   : > { %4135 = vmatpush3.msra.mxu1 %v2457_v55  ;;  %4136 = vmatprep.mubr.msk.f32.mxu1 %vm4258_vm0, %v4257_v0 }
 0x502   : > { %4144 = vmatprep.subr.mxu1 %v4257_v0  ;;  %v2494_v16 = vand.u32 4294901760, %v2493_v13 }
 0x504   : > { %4137 = vmatmul.mubr.f32.vlgmr.msra.gmra.mxu1 %v2494_v16  ;;  %v2495_v19 = vsub.f32 %v2493_v13, %v2494_v16 }
 0x505   : > { %4145 = vmatpush3.msra.mxu1 %v2457_v55  ;;  %4146 = vmatprep.mubr.msk.f32.mxu1 %vm4258_vm0, %v4257_v0 }
 0x506   : > { %4154 = vmatprep.subr.mxu1 %v4257_v0  ;;  %v2496_v22 = vand.u32 4294901760, %v2495_v19 }
 0x508   : > { %4122 = vmatmul.mubr.f32.vlgmr.msra.gmra.mxu0 %v2496_v22  ;;  %4147 = vmatmul.mubr.f32.vlgmr.msra.gmra.mxu1 %v2492_v11 }
 0x509   : > { %4130 = vmatpush3.msra.mxu0 %v2534_v56  ;;  %4155 = vmatpush3.xpose.msra.mxu1 %v2993_v20 }
 0x50a   : > { %4131 = vmatprep.mubr.msk.f32.mxu0 %vm4258_vm0, %v4257_v0  ;;  %4139 = vmatprep.subr.mxu0 %v4257_v0 }
 0x50b   : > { %4156 = vmatprep.mubr.msk.f32.mxu1 %vm4258_vm0, %v4257_v0  ;;  %4164 = vmatprep.subr.mxu1 %v4257_v0 }
 0x50c   : > { %4132 = vmatmul.mubr.f32.vlgmr.msra.gmra.mxu0 %v2493_v13  ;;  %4157 = vmatmul.mubr.f32.vlgmr.msra.gmra.mxu1 %v2948_v17 }
 0x50d   : > { %4140 = vmatpush3.msra.mxu0 %v2535_v57  ;;  %4165 = vmatpush3.xpose.msra.mxu1 %v2913_v5 }
 0x50e   : > { %4141 = vmatprep.mubr.msk.f32.mxu0 %vm4258_vm0, %v4257_v0  ;;  %4149 = vmatprep.subr.mxu0 %v4257_v0 }
 0x50f   : > { %4166 = vmatprep.mubr.msk.f32.mxu1 %vm4258_vm0, %v4257_v0  ;;  %4174 = vmatprep.subr.mxu1 %v4257_v0 }
 0x510   : > { %4142 = vmatmul.mubr.f32.vlgmr.msra.gmra.mxu0 %v2492_v11  ;;  %4167 = vmatmul.mubr.f32.vlgmr.msra.gmra.mxu1 %v2950_v24 }
 0x511   : > { %4150 = vmatpush3.xpose.msra.mxu0 %v2913_v5  ;;  %4175 = vmatpush3.xpose.msra.mxu1 %v2913_v5 }
 0x512   : > { %4151 = vmatprep.mubr.msk.f32.mxu0 %vm4258_vm0, %v4257_v0  ;;  %4159 = vmatprep.subr.mxu0 %v4257_v0 }
 0x513   : > { %4176 = vmatprep.mubr.msk.f32.mxu1 %vm4258_vm0, %v4257_v0  ;;  %4184 = vmatprep.subr.mxu1 %v4257_v0 }
 0x514   : > { %4152 = vmatmul.mubr.f32.vlgmr.msra.gmra.mxu0 %v2952_v31  ;;  %4177 = vmatmul.mubr.f32.vlgmr.msra.gmra.mxu1 %v2948_v17 }
 0x515   : > { %4160 = vmatpush3.xpose.msra.mxu0 %v4451_v6  ;;  %4161 = vmatprep.mubr.msk.f32.mxu0 %vm4258_vm0, %v4257_v0 }
 0x516   : > { %4169 = vmatprep.subr.mxu0 %v4257_v0  ;;  %4185 = vmatpush3.msra.mxu1 %v3455_v32 }
 0x517   : > { %4186 = vmatprep.mubr.msk.f32.mxu1 %vm4258_vm0, %v4257_v0  ;;  %4194 = vmatprep.subr.mxu1 %v4257_v0 }
 0x518   : > { %4162 = vmatmul.mubr.f32.vlgmr.msra.gmra.mxu0 %v2949_v21 }
 0x519   : > { %4170 = vmatpush3.xpose.msra.mxu0 %v2991_v9  ;;  %4171 = vmatprep.mubr.msk.f32.mxu0 %vm4258_vm0, %v4257_v0 }
 0x51a   : > { %4179 = vmatprep.subr.mxu0 %v4257_v0 }
 0x51c   : > { %4172 = vmatmul.mubr.f32.vlgmr.msra.gmra.mxu0 %v2948_v17 }
 0x51d   : > { %4180 = vmatpush3.msra.mxu0 %v4463_v18  ;;  %4181 = vmatprep.mubr.msk.f32.mxu0 %vm4258_vm0, %v4257_v0 }
 0x51e   : > { %4189 = vmatprep.subr.mxu0 %v4257_v0 }
 0x587   : > { %v2419_v19 = vpop.xlane.xlu0 %2418 }
 0x5c0   : > { %v2574_v33 = vpop.f32.mrf.mxu1 }
 0x5c2   : > { %v4128_v34 = vpop.f32.mrf.mxu1 }
 0x5c4   : > { %v2722_v35 = vpop.f32.mrf.mxu1 }
 0x5c6   : > { %v4138_v36 = vpop.f32.mrf.mxu1 }
 0x5c8   : > { %v2498_v2 = vpop.f32.mrf.mxu0  ;;  %v2868_v38 = vpop.f32.mrf.mxu1 }
 0x5c9   : > { %v2575_v39 = vadd.f32 %v2574_v33, %v2498_v2 }
 0x5ca   : > { %v4123_v40 = vpop.f32.mrf.mxu0  ;;  %v4148_v41 = vpop.f32.mrf.mxu1 }
 0x5cc   : > { %v2648_v42 = vpop.f32.mrf.mxu0  ;;  %v3030_v43 = vpop.f32.mrf.mxu1 }
 0x5cd   : > { %v2649_v44 = vadd.f32 %v2648_v42, %v2575_v39 }
 0x5ce   : > { %v4133_v45 = vpop.f32.mrf.mxu0  ;;  %v4158_v46 = vpop.f32.mrf.mxu1 }
 0x5cf   : > { %v2723_v47 = vadd.f32 %v2722_v35, %v2649_v44 }
 0x5d0   : > { %v2796_v48 = vpop.f32.mrf.mxu0  ;;  %v3178_v49 = vpop.f32.mrf.mxu1 }
 0x5d1   : > { %v2797_v50 = vadd.f32 %v2796_v48, %v2723_v47 }
 0x5d2   : > { %v4143_v52 = vpop.f32.mrf.mxu0  ;;  %v4168_v53 = vpop.f32.mrf.mxu1 }
 0x5d3   : > { %v2869_v54 = vadd.f32 %v2868_v38, %v2797_v50 }
 0x5d4   : > { %v2954_v55 = vpop.f32.mrf.mxu0  ;;  %v3324_v56 = vpop.f32.mrf.mxu1 }
 0x5d5   : > { %v3031_v60 = vadd.f32 %v3030_v43, %v2954_v55 }
 0x5d6   : > { %v4153_v57 = vpop.f32.mrf.mxu0  ;;  %v4178_v58 = vpop.f32.mrf.mxu1 }
 0x5d8   : > { %v3104_v61 = vpop.f32.mrf.mxu0 }
 0x5d9   : > { %v3105_v62 = vadd.f32 %v3104_v61, %v3031_v60 }
 0x5da   : > { %v4163_v63 = vpop.f32.mrf.mxu0 }
 0x5db   : > { %v3179_v3 = vadd.f32 %v3178_v49, %v3105_v62 }
 0x5dc   : > { %v3252_v4 = vpop.f32.mrf.mxu0 }
 0x5dd   : > { %v3253_v5 = vadd.f32 %v3252_v4, %v3179_v3 }
 0x5de   : > { %v4173_v6 = vpop.f32.mrf.mxu0 }
 0x5df   : > { %v3325_v7 = vadd.f32 %v3324_v56, %v3253_v5 }
 0x5e1   : > { %v3328_v8 = vsel %vm118_vm2, %v3325_v7, -1e+30 }
 0x5e2   : > { %v3329_v9 = vsel %vm122_vm1, %v3328_v8, -inf }
 0x5e3   : > { %3330 = vmax.xlane.f32.xlu1 %v3329_v9 }
 0x5e7   : > { %1500 = vadd.xlane.f32.xlu1 %v1499_v1 }
 0x66c   : > { %v3331_v10 = vpop.xlane.xlu1 %3330 }
 0x66d   : > { %v3332_v11 = vsub.f32 %v3328_v8, %v3331_v10 }
 0x66f   : > { %v3333_v12 = vmul.f32 1.442695, %v3332_v11 }
 0x670   : > { %v1501_v16 = vpop.xlane.xlu1 %1500 }
 0x671   : > { %4239 = vpow2.f32 %v3333_v12 }
 0x672   : > { %4241 = vrcp.f32 %v1501_v16 }
 0x673   : > { %4243 = vrcp.f32 %v2419_v19 }
 0x67e   : > { %v4240_v13 = vpop.eup %4239 }
 0x67f   : > { %v3335_v14 = vsel %vm122_vm1, %v4240_v13, 0.0  ;;  %v3342_v15 = vsel %vm122_vm1, %v4240_v13, 0  ;;  %v4242_v51 = vpop.eup %4241 }
 0x680   : > { %3336 = vadd.xlane.f32.xlu1 %v3335_v14  ;;  %v3410_v28 = vand.u32 4294901760, %v3342_v15  ;;  %v4244_v22 = vpop.eup %4243 }
 0x681   : > { %v2873_v24 = vmul.f32 %v4244_v22, %v2869_v54 }
 0x682   : > { %v3411_v29 = vsub.f32 %v3342_v15, %v3410_v28  ;;  %4187 = vmatmul.mubr.f32.vlgmr.msra.gmra.mxu1 %v3410_v28 }
 0x683   : > { %4195 = vmatpush3.msra.mxu1 %v4463_v18  ;;  %4196 = vmatprep.mubr.msk.f32.mxu1 %vm4258_vm0, %v4257_v0 }
 0x684   : > { %582 = vadd.xlane.f32.xlu1 %v581_v59  ;;  %4204 = vmatprep.subr.mxu1 %v4257_v0  ;;  %v3412_v17 = vand.u32 4294901760, %v3411_v29 }
 0x686   : > { %4197 = vmatmul.mubr.f32.vlgmr.msra.gmra.mxu1 %v3412_v17  ;;  %v3413_v20 = vsub.f32 %v3411_v29, %v3412_v17 }
 0x687   : > { %4205 = vmatpush3.msra.mxu1 %v4463_v18  ;;  %4206 = vmatprep.mubr.msk.f32.mxu1 %vm4258_vm0, %v4257_v0  ;;  %v1955_v18 = vmul.f32 %v4242_v51, %v4441_v37 }
 0x688   : > { %v3414_v21 = vand.u32 4294901760, %v3413_v20 }
 0x68a   : > { %4182 = vmatmul.mubr.f32.vlgmr.msra.gmra.mxu0 %v3414_v21  ;;  %4207 = vmatmul.mubr.f32.vlgmr.msra.gmra.mxu1 %v3410_v28 }
 0x68b   : > { %4190 = vmatpush3.msra.mxu0 %v4469_v23  ;;  %4191 = vmatprep.mubr.msk.f32.mxu0 %vm4258_vm0, %v4257_v0 }
 0x68c   : > { %4199 = vmatprep.subr.mxu0 %v4257_v0 }
 0x68e   : > { %4192 = vmatmul.mubr.f32.vlgmr.msra.gmra.mxu0 %v3411_v29 }
 0x68f   : > { %4200 = vmatpush3.msra.mxu0 %v3453_v25  ;;  %4201 = vmatprep.mubr.msk.f32.mxu0 %vm4258_vm0, %v4257_v0 }
 0x692   : > { %4202 = vmatmul.mubr.f32.vlgmr.msra.gmra.mxu0 %v3410_v28 }
 0x695   : > { %3793 = vrot.lane.b32.xlu1 %v1955_v18, %s4270_s23 }
 0x699   : > { %3797 = vrot.lane.b32.xlu1 %v2873_v24, %s4271_s24 }
 0x709   : > { %v3337_v31 = vpop.xlane.xlu1 %3336 }
 0x70a   : > { %4245 = vrcp.f32 %v3337_v31 }
 0x70d   : > { %v583_v45 = vpop.xlane.xlu1 %582 }
 0x70e   : > { %4247 = vrcp.f32 %v583_v45 }
 0x711   : > { %v3794_v48 = vpop.permute.xlu1 %3793 }
 0x715   : > { %v3798_v50 = vpop.permute.xlu1 %3797 }
 0x717   : > { %v4246_v43 = vpop.eup %4245 }
 0x71b   : > { %v4248_v46 = vpop.eup %4247 }
 0x71c   : > { %v1037_v47 = vmul.f32 %v4248_v46, %v4389_v27 }
 0x71e   : > { %v3804_v49 = vsel %vm122_vm1, %v1037_v47, %v3794_v48 }
 0x71f   : > { %v3806_v52 = vsel %vm3805_vm3, %v3804_v49, %v3798_v50 }
 0x742   : > { %v3492_v26 = vpop.f32.mrf.mxu1 }
 0x744   : > { %v4188_v30 = vpop.f32.mrf.mxu1 }
 0x746   : > { %v3640_v32 = vpop.f32.mrf.mxu1 }
 0x748   : > { %v4198_v33 = vpop.f32.mrf.mxu1 }
 0x74a   : > { %v3416_v23 = vpop.f32.mrf.mxu0  ;;  %v3786_v25 = vpop.f32.mrf.mxu1 }
 0x74b   : > { %v3493_v35 = vadd.f32 %v3492_v26, %v3416_v23 }
 0x74c   : > { %v4183_v34 = vpop.f32.mrf.mxu0  ;;  %v4208_v0 = vpop.f32.mrf.mxu1 }
 0x74e   : > { %v3566_v36 = vpop.f32.mrf.mxu0 }
 0x74f   : > { %v3567_v2 = vadd.f32 %v3566_v36, %v3493_v35 }
 0x750   : > { %v4193_v37 = vpop.f32.mrf.mxu0 }
 0x751   : > { %v3641_v38 = vadd.f32 %v3640_v32, %v3567_v2 }
 0x752   : > { %v3714_v39 = vpop.f32.mrf.mxu0 }
 0x753   : > { %v3715_v40 = vadd.f32 %v3714_v39, %v3641_v38 }
 0x754   : > { %v4203_v41 = vpop.f32.mrf.mxu0 }
 0x755   : > { %v3787_v42 = vadd.f32 %v3786_v25, %v3715_v40 }
 0x757   : > { %v3791_v44 = vmul.f32 %v4246_v43, %v3787_v42 }
 0x759   : > { %3801 = vrot.lane.b32.xlu0 %v3791_v44, %s4272_s25 }
 0x7cb   : > { %v3802_v53 = vpop.permute.xlu0 %3801 }
 0x7cc   : > { %v3808_v54 = vsel %vm3807_vm4, %v3806_v52, %v3802_v53 }
 0x7cd   : > { %3810 = vst.msk [vmem:[%s111_s28] sm:$0xff] %vm3809_vm5, %v3808_v54 }
 0x7ce PF: > { %s11_s6 = sadd.s32 1, %s4255_s6  }
 0x7cf   : > { %p8_p4 = scmp.ge.s32.totalorder %s11_s6, 4  }
 0x7d1   :  { %10 = sbr.rel (!%p8_p4) target bundleno = 1 (0x1), region = 54 }

</bundles_post_ra>
